<compile_context>
chip_gen: v7x
topology: tpu7x:2x2x1
jax: 0.10.0
libtpu: 0.0.40
codegen_flags: <defaults>
</compile_context>

<pallas_src>
import jax
import jax.numpy as jnp
from jax.experimental import pallas as pl
from jax.experimental.pallas import tpu as pltpu

# YoloV2Loss.__init__ defaults
S = 7
B = 2
C = 20
COORD_W = 5.0
NOOBJ_W = 0.5
LENGTH = C + B * 5          # 30

assert B == 2, "best-box selection below is specialized for B == 2"
assert B * 5 - 1 < C, "reference noobj quirk rows i*5+4 must lie in class slab"

_LANE = 128
_ROW_ALIGN = 16             # bf16 sublane packing: blocks = whole (16,128) tiles
_MAX_ROWS_PER_BLOCK = 64    # 8192 cells/block: ~0.5 MB bf16 per input block
_INGEST_DTYPE = jnp.bfloat16


def _cdiv(a, b):
    return -(-a // b)


def _sq(a, b):
    d = a - b
    return d * d


def _tree_sum(terms):
    """Pairwise-tree sum of same-shape slabs (ILP-friendly, pure VALU adds)."""
    terms = list(terms)
    while len(terms) > 1:
        nxt = [terms[k] + terms[k + 1] for k in range(0, len(terms) - 1, 2)]
        if len(terms) % 2:
            nxt.append(terms[-1])
        terms = nxt
    return terms[0]


def _yolo_v2_loss_kernel(p_ref, t_ref, out_ref):
    # p/t blocks: (LENGTH, R, 128) bf16 -- feature rows on the leading axis,
    # cells packed dense on (sublane, lane).  Upcast to f32 once after load.
    p = p_ref[...].astype(jnp.float32)
    t = t_ref[...].astype(jnp.float32)

    # cell masks from the LAST feature row (target[:, :, -1], as in reference)
    last_conf = t[LENGTH - 1]                               # (R, 128)
    coord_mask = (last_conf > 0).astype(jnp.float32)        # cells with object
    noobj_mask = (last_conf == 0).astype(jnp.float32)       # cells without

    # ---- class term: sum of squared diffs over the C class rows -------------
    cls_sq = [_sq(p[k], t[k]) for k in range(C)]            # C x (R, 128)
    cls_sum = _tree_sum(cls_sq)

    # ---- noobj term: the reference masks columns i*5+4 of the FULL length-30
    # row, i.e. CLASS rows 4 and 9 (quirk of the original code, reproduced
    # verbatim: `noobjTargetMask[:, i * 5 + 4] = 1`) --------------------------
    noobj_term = _tree_sum([cls_sq[i * 5 + 4] for i in range(B)])

    # ---- boxes --------------------------------------------------------------
    # The reference squares w,h IN PLACE and converts cxcywh -> xyxy IN PLACE
    # (through views of boxPredict/boxTarget), so the localization losses use
    # the CONVERTED coords of both prediction and target, the contain loss
    # uses the untouched raw confidences, and converted box area is w^2 * h^2.
    def convert(arr, r):
        base = C + 5 * r
        cx, cy, w, h = arr[base], arr[base + 1], arr[base + 2], arr[base + 3]
        w2 = w * w
        h2 = h * h
        return (cx - 0.5 * w2, cy - 0.5 * h2,
                cx + 0.5 * w2, cy + 0.5 * h2, w2 * h2)

    pb = [convert(p, r) for r in range(B)]   # (x1, y1, x2, y2, area)
    tb = [convert(t, r) for r in range(B)]

    def inter_union(a, b):
        ax1, ay1, ax2, ay2, area_a = a
        bx1, by1, bx2, by2, area_b = b
        iw = jnp.maximum(jnp.minimum(ax2, bx2) - jnp.maximum(ax1, bx1), 0.0)
        ih = jnp.maximum(jnp.minimum(ay2, by2) - jnp.maximum(ay1, by1), 0.0)
        inter = iw * ih
        return inter, area_a + area_b - inter

    # B=2 best-box selection, division-free: the reference picks, for each
    # target box b, argmax_a iou[a][b] with first-index-wins ties.  Both
    # unions are >= 0, so  iou1 > iou0  <=>  inter1*union0 > inter0*union1.
    i00, u00 = inter_union(pb[0], tb[0])
    i10, u10 = inter_union(pb[1], tb[0])
    i01, u01 = inter_union(pb[0], tb[1])
    i11, u11 = inter_union(pb[1], tb[1])
    g0 = i10 * u00 > i00 * u10           # pred 1 strictly beats pred 0 on tgt 0
    g1 = i11 * u01 > i01 * u11           # pred 1 strictly beats pred 0 on tgt 1
    resp1 = jnp.logical_or(g0, g1)                    # pred box 1 responsive
    resp0 = jnp.logical_not(jnp.logical_and(g0, g1))  # pred box 0 responsive
    resp = (resp0.astype(jnp.float32), resp1.astype(jnp.float32))

    box_terms = None
    for r in range(B):
        ci = C + 5 * r + 4
        conf_sq = _sq(p[ci], t[ci])                    # contain term (raw conf)
        px1, py1, px2, py2, _ = pb[r]
        tx1, ty1, tx2, ty2, _ = tb[r]
        loc = (_sq(px1, tx1) + _sq(py1, ty1)           # xy term (converted)
               + _sq(px2, tx2) + _sq(py2, ty2))        # wh term (converted)
        term = resp[r] * (conf_sq + COORD_W * loc)
        box_terms = term if box_terms is None else box_terms + term

    # ---- fused per-cell loss, (R, 128) --------------------------------------
    loss_vec = (coord_mask * (cls_sum + box_terms)
                + NOOBJ_W * (noobj_mask * noobj_term))

    # fold rows down to one dense (8, 128) partial with a pairwise tree of
    # full-vreg adds, then a single unmasked store (no zero-fill, no masking).
    rows = loss_vec.shape[0]
    out_ref[...] = _tree_sum([loss_vec[j * 8:(j + 1) * 8]
                              for j in range(rows // 8)])


def _choose_tiling(n_cells):
    """Exact-fit tiling of the cell axis into 128-lane rows, 16-row aligned."""
    rows = _cdiv(n_cells, _LANE)
    rows_a = _cdiv(rows, _ROW_ALIGN) * _ROW_ALIGN
    num_blocks = _cdiv(rows_a, _MAX_ROWS_PER_BLOCK)
    if num_blocks == 1 and rows_a >= 2 * _ROW_ALIGN:
        num_blocks = 2                   # >= 2 parallel blocks -> v7x megacore
    if num_blocks > 1 and num_blocks % 2:
        num_blocks += 1                  # even split across the 2 TensorCores
    rows_per_block = _cdiv(_cdiv(rows_a, num_blocks), _ROW_ALIGN) * _ROW_ALIGN
    return num_blocks, rows_per_block


@jax.jit
def yolo_v2_loss(predict, target):
    """predict: [batch, S*S*LENGTH], target: [batch, S, S, LENGTH] -> scalar."""
    batch = target.shape[0]
    n = batch * S * S

    num_blocks, rows_per_block = _choose_tiling(n)
    rows_pad = num_blocks * rows_per_block
    n_pad = rows_pad * _LANE

    # bf16 ingest halves HBM bytes of the relayout pass and the kernel DMA;
    # the kernel upcasts to f32 right after load.
    p = predict.reshape(n, LENGTH).astype(_INGEST_DTYPE)
    t = target.reshape(n, LENGTH).astype(_INGEST_DTYPE)
    # pad cells (all-zero padding contributes exactly 0 to every term), go
    # feature-major, then split the cell axis into (sublane-row, lane) so every
    # per-feature slice inside the kernel is a dense (rows, 128) slab.  The
    # pad + transpose + reshape fuse into one XLA layout pass.
    # TODO(synk): if tracing shows this relayout pass dominating at real YOLO
    # sizes, move the transpose into the kernel (read (tile, LENGTH) blocks).
    if n_pad != n:
        p = jnp.pad(p, ((0, n_pad - n), (0, 0)))
        t = jnp.pad(t, ((0, n_pad - n), (0, 0)))
    p = p.T.reshape(LENGTH, rows_pad, _LANE)
    t = t.T.reshape(LENGTH, rows_pad, _LANE)

    partials = pl.pallas_call(
        _yolo_v2_loss_kernel,
        out_shape=jax.ShapeDtypeStruct((num_blocks, 8, _LANE), jnp.float32),
        grid=(num_blocks,),
        in_specs=[
            pl.BlockSpec((LENGTH, rows_per_block, _LANE), lambda i: (0, i, 0)),
            pl.BlockSpec((LENGTH, rows_per_block, _LANE), lambda i: (0, i, 0)),
        ],
        out_specs=pl.BlockSpec((None, 8, _LANE), lambda i: (i, 0, 0)),
        compiler_params=pltpu.CompilerParams(
            dimension_semantics=("parallel",)),
    )(p, t)

    # tiny reduction over the per-block (8,128) partials done by XLA.
    return jnp.sum(partials)


if __name__ == "__main__":
    key = jax.random.PRNGKey(0)
    k1, k2, k3 = jax.random.split(key, 3)
    batch = 2

    predict = 0.5 + 0.1 * jax.random.normal(
        k1, (batch, S * S * LENGTH), dtype=jnp.float32)
    target = jax.random.uniform(k2, (batch, S, S, LENGTH), dtype=jnp.float32)
    # make the last confidence exactly 0 or 1 so both the coord and the noobj
    # branches of the loss are exercised (matches real YOLO targets).
    obj = (jax.random.uniform(k3, (batch, S, S)) > 0.5).astype(jnp.float32)
    target = target.at[..., LENGTH - 1].set(obj)

    loss = yolo_v2_loss(predict, target)
    jax.block_until_ready(loss)
    print("KERNEL_OK")
</pallas_src>

<mosaic_0001>
module attributes {stable_mosaic.version = 11 : i64} {
  func.func @_yolo_v2_loss_kernel(%arg0: i32, %arg1: memref<30x16x128xbf16, #tpu.memory_space<vmem>>, %arg2: memref<30x16x128xbf16, #tpu.memory_space<vmem>>, %arg3: memref<1x8x128xf32, #tpu.memory_space<vmem>>) attributes {dimension_semantics = [#tpu.dimension_semantics<parallel>], iteration_bounds = array<i64: 1>, scalar_prefetch = 0 : i64, scratch_operands = 0 : i64, tpu.core_type = #tpu.core_type<tc>, window_params = [{transform_indices = @transform_0, window_bounds = array<i64: 30, 16, 128>}, {transform_indices = @transform_1, window_bounds = array<i64: 30, 16, 128>}, {transform_indices = @transform_2, window_bounds = array<i64: 1, 8, 128>}]} {
    %c0 = arith.constant 0 : index
    %c0_0 = arith.constant 0 : index
    %c0_1 = arith.constant 0 : index
    %0 = vector.load %arg1[%c0, %c0_0, %c0_1] : memref<30x16x128xbf16, #tpu.memory_space<vmem>>, vector<30x16x128xbf16>
    %1 = arith.extf %0 : vector<30x16x128xbf16> to vector<30x16x128xf32>
    %c0_2 = arith.constant 0 : index
    %c0_3 = arith.constant 0 : index
    %c0_4 = arith.constant 0 : index
    %2 = vector.load %arg2[%c0_2, %c0_3, %c0_4] : memref<30x16x128xbf16, #tpu.memory_space<vmem>>, vector<30x16x128xbf16>
    %3 = arith.extf %2 : vector<30x16x128xbf16> to vector<30x16x128xf32>
    %4 = vector.extract_strided_slice %3 {offsets = [29, 0, 0], sizes = [1, 16, 128], strides = [1, 1, 1]} : vector<30x16x128xf32> to vector<1x16x128xf32>
    %5 = vector.shape_cast %4 : vector<1x16x128xf32> to vector<16x128xf32>
    %cst = arith.constant 0.000000e+00 : f32
    %6 = vector.broadcast %cst : f32 to vector<16x128xf32>
    %7 = arith.cmpf ogt, %5, %6 : vector<16x128xf32>
    %8 = arith.extui %7 : vector<16x128xi1> to vector<16x128xi32>
    %9 = arith.sitofp %8 : vector<16x128xi32> to vector<16x128xf32>
    %cst_5 = arith.constant 0.000000e+00 : f32
    %10 = vector.broadcast %cst_5 : f32 to vector<16x128xf32>
    %11 = arith.cmpf oeq, %5, %10 : vector<16x128xf32>
    %12 = arith.extui %11 : vector<16x128xi1> to vector<16x128xi32>
    %13 = arith.sitofp %12 : vector<16x128xi32> to vector<16x128xf32>
    %14 = vector.extract_strided_slice %1 {offsets = [0, 0, 0], sizes = [1, 16, 128], strides = [1, 1, 1]} : vector<30x16x128xf32> to vector<1x16x128xf32>
    %15 = vector.shape_cast %14 : vector<1x16x128xf32> to vector<16x128xf32>
    %16 = vector.extract_strided_slice %3 {offsets = [0, 0, 0], sizes = [1, 16, 128], strides = [1, 1, 1]} : vector<30x16x128xf32> to vector<1x16x128xf32>
    %17 = vector.shape_cast %16 : vector<1x16x128xf32> to vector<16x128xf32>
    %18 = arith.subf %15, %17 : vector<16x128xf32>
    %19 = arith.mulf %18, %18 : vector<16x128xf32>
    %20 = vector.extract_strided_slice %1 {offsets = [1, 0, 0], sizes = [1, 16, 128], strides = [1, 1, 1]} : vector<30x16x128xf32> to vector<1x16x128xf32>
    %21 = vector.shape_cast %20 : vector<1x16x128xf32> to vector<16x128xf32>
    %22 = vector.extract_strided_slice %3 {offsets = [1, 0, 0], sizes = [1, 16, 128], strides = [1, 1, 1]} : vector<30x16x128xf32> to vector<1x16x128xf32>
    %23 = vector.shape_cast %22 : vector<1x16x128xf32> to vector<16x128xf32>
    %24 = arith.subf %21, %23 : vector<16x128xf32>
    %25 = arith.mulf %24, %24 : vector<16x128xf32>
    %26 = vector.extract_strided_slice %1 {offsets = [2, 0, 0], sizes = [1, 16, 128], strides = [1, 1, 1]} : vector<30x16x128xf32> to vector<1x16x128xf32>
    %27 = vector.shape_cast %26 : vector<1x16x128xf32> to vector<16x128xf32>
    %28 = vector.extract_strided_slice %3 {offsets = [2, 0, 0], sizes = [1, 16, 128], strides = [1, 1, 1]} : vector<30x16x128xf32> to vector<1x16x128xf32>
    %29 = vector.shape_cast %28 : vector<1x16x128xf32> to vector<16x128xf32>
    %30 = arith.subf %27, %29 : vector<16x128xf32>
    %31 = arith.mulf %30, %30 : vector<16x128xf32>
    %32 = vector.extract_strided_slice %1 {offsets = [3, 0, 0], sizes = [1, 16, 128], strides = [1, 1, 1]} : vector<30x16x128xf32> to vector<1x16x128xf32>
    %33 = vector.shape_cast %32 : vector<1x16x128xf32> to vector<16x128xf32>
    %34 = vector.extract_strided_slice %3 {offsets = [3, 0, 0], sizes = [1, 16, 128], strides = [1, 1, 1]} : vector<30x16x128xf32> to vector<1x16x128xf32>
    %35 = vector.shape_cast %34 : vector<1x16x128xf32> to vector<16x128xf32>
    %36 = arith.subf %33, %35 : vector<16x128xf32>
    %37 = arith.mulf %36, %36 : vector<16x128xf32>
    %38 = vector.extract_strided_slice %1 {offsets = [4, 0, 0], sizes = [1, 16, 128], strides = [1, 1, 1]} : vector<30x16x128xf32> to vector<1x16x128xf32>
    %39 = vector.shape_cast %38 : vector<1x16x128xf32> to vector<16x128xf32>
    %40 = vector.extract_strided_slice %3 {offsets = [4, 0, 0], sizes = [1, 16, 128], strides = [1, 1, 1]} : vector<30x16x128xf32> to vector<1x16x128xf32>
    %41 = vector.shape_cast %40 : vector<1x16x128xf32> to vector<16x128xf32>
    %42 = arith.subf %39, %41 : vector<16x128xf32>
    %43 = arith.mulf %42, %42 : vector<16x128xf32>
    %44 = vector.extract_strided_slice %1 {offsets = [5, 0, 0], sizes = [1, 16, 128], strides = [1, 1, 1]} : vector<30x16x128xf32> to vector<1x16x128xf32>
    %45 = vector.shape_cast %44 : vector<1x16x128xf32> to vector<16x128xf32>
    %46 = vector.extract_strided_slice %3 {offsets = [5, 0, 0], sizes = [1, 16, 128], strides = [1, 1, 1]} : vector<30x16x128xf32> to vector<1x16x128xf32>
    %47 = vector.shape_cast %46 : vector<1x16x128xf32> to vector<16x128xf32>
    %48 = arith.subf %45, %47 : vector<16x128xf32>
    %49 = arith.mulf %48, %48 : vector<16x128xf32>
    %50 = vector.extract_strided_slice %1 {offsets = [6, 0, 0], sizes = [1, 16, 128], strides = [1, 1, 1]} : vector<30x16x128xf32> to vector<1x16x128xf32>
    %51 = vector.shape_cast %50 : vector<1x16x128xf32> to vector<16x128xf32>
    %52 = vector.extract_strided_slice %3 {offsets = [6, 0, 0], sizes = [1, 16, 128], strides = [1, 1, 1]} : vector<30x16x128xf32> to vector<1x16x128xf32>
    %53 = vector.shape_cast %52 : vector<1x16x128xf32> to vector<16x128xf32>
    %54 = arith.subf %51, %53 : vector<16x128xf32>
    %55 = arith.mulf %54, %54 : vector<16x128xf32>
    %56 = vector.extract_strided_slice %1 {offsets = [7, 0, 0], sizes = [1, 16, 128], strides = [1, 1, 1]} : vector<30x16x128xf32> to vector<1x16x128xf32>
    %57 = vector.shape_cast %56 : vector<1x16x128xf32> to vector<16x128xf32>
    %58 = vector.extract_strided_slice %3 {offsets = [7, 0, 0], sizes = [1, 16, 128], strides = [1, 1, 1]} : vector<30x16x128xf32> to vector<1x16x128xf32>
    %59 = vector.shape_cast %58 : vector<1x16x128xf32> to vector<16x128xf32>
    %60 = arith.subf %57, %59 : vector<16x128xf32>
    %61 = arith.mulf %60, %60 : vector<16x128xf32>
    %62 = vector.extract_strided_slice %1 {offsets = [8, 0, 0], sizes = [1, 16, 128], strides = [1, 1, 1]} : vector<30x16x128xf32> to vector<1x16x128xf32>
    %63 = vector.shape_cast %62 : vector<1x16x128xf32> to vector<16x128xf32>
    %64 = vector.extract_strided_slice %3 {offsets = [8, 0, 0], sizes = [1, 16, 128], strides = [1, 1, 1]} : vector<30x16x128xf32> to vector<1x16x128xf32>
    %65 = vector.shape_cast %64 : vector<1x16x128xf32> to vector<16x128xf32>
    %66 = arith.subf %63, %65 : vector<16x128xf32>
    %67 = arith.mulf %66, %66 : vector<16x128xf32>
    %68 = vector.extract_strided_slice %1 {offsets = [9, 0, 0], sizes = [1, 16, 128], strides = [1, 1, 1]} : vector<30x16x128xf32> to vector<1x16x128xf32>
    %69 = vector.shape_cast %68 : vector<1x16x128xf32> to vector<16x128xf32>
    %70 = vector.extract_strided_slice %3 {offsets = [9, 0, 0], sizes = [1, 16, 128], strides = [1, 1, 1]} : vector<30x16x128xf32> to vector<1x16x128xf32>
    %71 = vector.shape_cast %70 : vector<1x16x128xf32> to vector<16x128xf32>
    %72 = arith.subf %69, %71 : vector<16x128xf32>
    %73 = arith.mulf %72, %72 : vector<16x128xf32>
    %74 = vector.extract_strided_slice %1 {offsets = [10, 0, 0], sizes = [1, 16, 128], strides = [1, 1, 1]} : vector<30x16x128xf32> to vector<1x16x128xf32>
    %75 = vector.shape_cast %74 : vector<1x16x128xf32> to vector<16x128xf32>
    %76 = vector.extract_strided_slice %3 {offsets = [10, 0, 0], sizes = [1, 16, 128], strides = [1, 1, 1]} : vector<30x16x128xf32> to vector<1x16x128xf32>
    %77 = vector.shape_cast %76 : vector<1x16x128xf32> to vector<16x128xf32>
    %78 = arith.subf %75, %77 : vector<16x128xf32>
    %79 = arith.mulf %78, %78 : vector<16x128xf32>
    %80 = vector.extract_strided_slice %1 {offsets = [11, 0, 0], sizes = [1, 16, 128], strides = [1, 1, 1]} : vector<30x16x128xf32> to vector<1x16x128xf32>
    %81 = vector.shape_cast %80 : vector<1x16x128xf32> to vector<16x128xf32>
    %82 = vector.extract_strided_slice %3 {offsets = [11, 0, 0], sizes = [1, 16, 128], strides = [1, 1, 1]} : vector<30x16x128xf32> to vector<1x16x128xf32>
    %83 = vector.shape_cast %82 : vector<1x16x128xf32> to vector<16x128xf32>
    %84 = arith.subf %81, %83 : vector<16x128xf32>
    %85 = arith.mulf %84, %84 : vector<16x128xf32>
    %86 = vector.extract_strided_slice %1 {offsets = [12, 0, 0], sizes = [1, 16, 128], strides = [1, 1, 1]} : vector<30x16x128xf32> to vector<1x16x128xf32>
    %87 = vector.shape_cast %86 : vector<1x16x128xf32> to vector<16x128xf32>
    %88 = vector.extract_strided_slice %3 {offsets = [12, 0, 0], sizes = [1, 16, 128], strides = [1, 1, 1]} : vector<30x16x128xf32> to vector<1x16x128xf32>
    %89 = vector.shape_cast %88 : vector<1x16x128xf32> to vector<16x128xf32>
    %90 = arith.subf %87, %89 : vector<16x128xf32>
    %91 = arith.mulf %90, %90 : vector<16x128xf32>
    %92 = vector.extract_strided_slice %1 {offsets = [13, 0, 0], sizes = [1, 16, 128], strides = [1, 1, 1]} : vector<30x16x128xf32> to vector<1x16x128xf32>
    %93 = vector.shape_cast %92 : vector<1x16x128xf32> to vector<16x128xf32>
    %94 = vector.extract_strided_slice %3 {offsets = [13, 0, 0], sizes = [1, 16, 128], strides = [1, 1, 1]} : vector<30x16x128xf32> to vector<1x16x128xf32>
    %95 = vector.shape_cast %94 : vector<1x16x128xf32> to vector<16x128xf32>
    %96 = arith.subf %93, %95 : vector<16x128xf32>
    %97 = arith.mulf %96, %96 : vector<16x128xf32>
    %98 = vector.extract_strided_slice %1 {offsets = [14, 0, 0], sizes = [1, 16, 128], strides = [1, 1, 1]} : vector<30x16x128xf32> to vector<1x16x128xf32>
    %99 = vector.shape_cast %98 : vector<1x16x128xf32> to vector<16x128xf32>
    %100 = vector.extract_strided_slice %3 {offsets = [14, 0, 0], sizes = [1, 16, 128], strides = [1, 1, 1]} : vector<30x16x128xf32> to vector<1x16x128xf32>
    %101 = vector.shape_cast %100 : vector<1x16x128xf32> to vector<16x128xf32>
    %102 = arith.subf %99, %101 : vector<16x128xf32>
    %103 = arith.mulf %102, %102 : vector<16x128xf32>
    %104 = vector.extract_strided_slice %1 {offsets = [15, 0, 0], sizes = [1, 16, 128], strides = [1, 1, 1]} : vector<30x16x128xf32> to vector<1x16x128xf32>
    %105 = vector.shape_cast %104 : vector<1x16x128xf32> to vector<16x128xf32>
    %106 = vector.extract_strided_slice %3 {offsets = [15, 0, 0], sizes = [1, 16, 128], strides = [1, 1, 1]} : vector<30x16x128xf32> to vector<1x16x128xf32>
    %107 = vector.shape_cast %106 : vector<1x16x128xf32> to vector<16x128xf32>
    %108 = arith.subf %105, %107 : vector<16x128xf32>
    %109 = arith.mulf %108, %108 : vector<16x128xf32>
    %110 = vector.extract_strided_slice %1 {offsets = [16, 0, 0], sizes = [1, 16, 128], strides = [1, 1, 1]} : vector<30x16x128xf32> to vector<1x16x128xf32>
    %111 = vector.shape_cast %110 : vector<1x16x128xf32> to vector<16x128xf32>
    %112 = vector.extract_strided_slice %3 {offsets = [16, 0, 0], sizes = [1, 16, 128], strides = [1, 1, 1]} : vector<30x16x128xf32> to vector<1x16x128xf32>
    %113 = vector.shape_cast %112 : vector<1x16x128xf32> to vector<16x128xf32>
    %114 = arith.subf %111, %113 : vector<16x128xf32>
    %115 = arith.mulf %114, %114 : vector<16x128xf32>
    %116 = vector.extract_strided_slice %1 {offsets = [17, 0, 0], sizes = [1, 16, 128], strides = [1, 1, 1]} : vector<30x16x128xf32> to vector<1x16x128xf32>
    %117 = vector.shape_cast %116 : vector<1x16x128xf32> to vector<16x128xf32>
    %118 = vector.extract_strided_slice %3 {offsets = [17, 0, 0], sizes = [1, 16, 128], strides = [1, 1, 1]} : vector<30x16x128xf32> to vector<1x16x128xf32>
    %119 = vector.shape_cast %118 : vector<1x16x128xf32> to vector<16x128xf32>
    %120 = arith.subf %117, %119 : vector<16x128xf32>
    %121 = arith.mulf %120, %120 : vector<16x128xf32>
    %122 = vector.extract_strided_slice %1 {offsets = [18, 0, 0], sizes = [1, 16, 128], strides = [1, 1, 1]} : vector<30x16x128xf32> to vector<1x16x128xf32>
    %123 = vector.shape_cast %122 : vector<1x16x128xf32> to vector<16x128xf32>
    %124 = vector.extract_strided_slice %3 {offsets = [18, 0, 0], sizes = [1, 16, 128], strides = [1, 1, 1]} : vector<30x16x128xf32> to vector<1x16x128xf32>
    %125 = vector.shape_cast %124 : vector<1x16x128xf32> to vector<16x128xf32>
    %126 = arith.subf %123, %125 : vector<16x128xf32>
    %127 = arith.mulf %126, %126 : vector<16x128xf32>
    %128 = vector.extract_strided_slice %1 {offsets = [19, 0, 0], sizes = [1, 16, 128], strides = [1, 1, 1]} : vector<30x16x128xf32> to vector<1x16x128xf32>
    %129 = vector.shape_cast %128 : vector<1x16x128xf32> to vector<16x128xf32>
    %130 = vector.extract_strided_slice %3 {offsets = [19, 0, 0], sizes = [1, 16, 128], strides = [1, 1, 1]} : vector<30x16x128xf32> to vector<1x16x128xf32>
    %131 = vector.shape_cast %130 : vector<1x16x128xf32> to vector<16x128xf32>
    %132 = arith.subf %129, %131 : vector<16x128xf32>
    %133 = arith.mulf %132, %132 : vector<16x128xf32>
    %134 = arith.addf %19, %25 : vector<16x128xf32>
    %135 = arith.addf %31, %37 : vector<16x128xf32>
    %136 = arith.addf %43, %49 : vector<16x128xf32>
    %137 = arith.addf %55, %61 : vector<16x128xf32>
    %138 = arith.addf %67, %73 : vector<16x128xf32>
    %139 = arith.addf %79, %85 : vector<16x128xf32>
    %140 = arith.addf %91, %97 : vector<16x128xf32>
    %141 = arith.addf %103, %109 : vector<16x128xf32>
    %142 = arith.addf %115, %121 : vector<16x128xf32>
    %143 = arith.addf %127, %133 : vector<16x128xf32>
    %144 = arith.addf %134, %135 : vector<16x128xf32>
    %145 = arith.addf %136, %137 : vector<16x128xf32>
    %146 = arith.addf %138, %139 : vector<16x128xf32>
    %147 = arith.addf %140, %141 : vector<16x128xf32>
    %148 = arith.addf %142, %143 : vector<16x128xf32>
    %149 = arith.addf %144, %145 : vector<16x128xf32>
    %150 = arith.addf %146, %147 : vector<16x128xf32>
    %151 = arith.addf %149, %150 : vector<16x128xf32>
    %152 = arith.addf %151, %148 : vector<16x128xf32>
    %153 = arith.addf %43, %73 : vector<16x128xf32>
    %154 = vector.extract_strided_slice %1 {offsets = [20, 0, 0], sizes = [1, 16, 128], strides = [1, 1, 1]} : vector<30x16x128xf32> to vector<1x16x128xf32>
    %155 = vector.shape_cast %154 : vector<1x16x128xf32> to vector<16x128xf32>
    %156 = vector.extract_strided_slice %1 {offsets = [21, 0, 0], sizes = [1, 16, 128], strides = [1, 1, 1]} : vector<30x16x128xf32> to vector<1x16x128xf32>
    %157 = vector.shape_cast %156 : vector<1x16x128xf32> to vector<16x128xf32>
    %158 = vector.extract_strided_slice %1 {offsets = [22, 0, 0], sizes = [1, 16, 128], strides = [1, 1, 1]} : vector<30x16x128xf32> to vector<1x16x128xf32>
    %159 = vector.shape_cast %158 : vector<1x16x128xf32> to vector<16x128xf32>
    %160 = vector.extract_strided_slice %1 {offsets = [23, 0, 0], sizes = [1, 16, 128], strides = [1, 1, 1]} : vector<30x16x128xf32> to vector<1x16x128xf32>
    %161 = vector.shape_cast %160 : vector<1x16x128xf32> to vector<16x128xf32>
    %162 = arith.mulf %159, %159 : vector<16x128xf32>
    %163 = arith.mulf %161, %161 : vector<16x128xf32>
    %cst_6 = arith.constant 5.000000e-01 : f32
    %164 = vector.broadcast %cst_6 : f32 to vector<16x128xf32>
    %165 = arith.mulf %164, %162 : vector<16x128xf32>
    %166 = arith.subf %155, %165 : vector<16x128xf32>
    %cst_7 = arith.constant 5.000000e-01 : f32
    %167 = vector.broadcast %cst_7 : f32 to vector<16x128xf32>
    %168 = arith.mulf %167, %163 : vector<16x128xf32>
    %169 = arith.subf %157, %168 : vector<16x128xf32>
    %cst_8 = arith.constant 5.000000e-01 : f32
    %170 = vector.broadcast %cst_8 : f32 to vector<16x128xf32>
    %171 = arith.mulf %170, %162 : vector<16x128xf32>
    %172 = arith.addf %155, %171 : vector<16x128xf32>
    %cst_9 = arith.constant 5.000000e-01 : f32
    %173 = vector.broadcast %cst_9 : f32 to vector<16x128xf32>
    %174 = arith.mulf %173, %163 : vector<16x128xf32>
    %175 = arith.addf %157, %174 : vector<16x128xf32>
    %176 = arith.mulf %162, %163 : vector<16x128xf32>
    %177 = vector.extract_strided_slice %1 {offsets = [25, 0, 0], sizes = [1, 16, 128], strides = [1, 1, 1]} : vector<30x16x128xf32> to vector<1x16x128xf32>
    %178 = vector.shape_cast %177 : vector<1x16x128xf32> to vector<16x128xf32>
    %179 = vector.extract_strided_slice %1 {offsets = [26, 0, 0], sizes = [1, 16, 128], strides = [1, 1, 1]} : vector<30x16x128xf32> to vector<1x16x128xf32>
    %180 = vector.shape_cast %179 : vector<1x16x128xf32> to vector<16x128xf32>
    %181 = vector.extract_strided_slice %1 {offsets = [27, 0, 0], sizes = [1, 16, 128], strides = [1, 1, 1]} : vector<30x16x128xf32> to vector<1x16x128xf32>
    %182 = vector.shape_cast %181 : vector<1x16x128xf32> to vector<16x128xf32>
    %183 = vector.extract_strided_slice %1 {offsets = [28, 0, 0], sizes = [1, 16, 128], strides = [1, 1, 1]} : vector<30x16x128xf32> to vector<1x16x128xf32>
    %184 = vector.shape_cast %183 : vector<1x16x128xf32> to vector<16x128xf32>
    %185 = arith.mulf %182, %182 : vector<16x128xf32>
    %186 = arith.mulf %184, %184 : vector<16x128xf32>
    %cst_10 = arith.constant 5.000000e-01 : f32
    %187 = vector.broadcast %cst_10 : f32 to vector<16x128xf32>
    %188 = arith.mulf %187, %185 : vector<16x128xf32>
    %189 = arith.subf %178, %188 : vector<16x128xf32>
    %cst_11 = arith.constant 5.000000e-01 : f32
    %190 = vector.broadcast %cst_11 : f32 to vector<16x128xf32>
    %191 = arith.mulf %190, %186 : vector<16x128xf32>
    %192 = arith.subf %180, %191 : vector<16x128xf32>
    %cst_12 = arith.constant 5.000000e-01 : f32
    %193 = vector.broadcast %cst_12 : f32 to vector<16x128xf32>
    %194 = arith.mulf %193, %185 : vector<16x128xf32>
    %195 = arith.addf %178, %194 : vector<16x128xf32>
    %cst_13 = arith.constant 5.000000e-01 : f32
    %196 = vector.broadcast %cst_13 : f32 to vector<16x128xf32>
    %197 = arith.mulf %196, %186 : vector<16x128xf32>
    %198 = arith.addf %180, %197 : vector<16x128xf32>
    %199 = arith.mulf %185, %186 : vector<16x128xf32>
    %200 = vector.extract_strided_slice %3 {offsets = [20, 0, 0], sizes = [1, 16, 128], strides = [1, 1, 1]} : vector<30x16x128xf32> to vector<1x16x128xf32>
    %201 = vector.shape_cast %200 : vector<1x16x128xf32> to vector<16x128xf32>
    %202 = vector.extract_strided_slice %3 {offsets = [21, 0, 0], sizes = [1, 16, 128], strides = [1, 1, 1]} : vector<30x16x128xf32> to vector<1x16x128xf32>
    %203 = vector.shape_cast %202 : vector<1x16x128xf32> to vector<16x128xf32>
    %204 = vector.extract_strided_slice %3 {offsets = [22, 0, 0], sizes = [1, 16, 128], strides = [1, 1, 1]} : vector<30x16x128xf32> to vector<1x16x128xf32>
    %205 = vector.shape_cast %204 : vector<1x16x128xf32> to vector<16x128xf32>
    %206 = vector.extract_strided_slice %3 {offsets = [23, 0, 0], sizes = [1, 16, 128], strides = [1, 1, 1]} : vector<30x16x128xf32> to vector<1x16x128xf32>
    %207 = vector.shape_cast %206 : vector<1x16x128xf32> to vector<16x128xf32>
    %208 = arith.mulf %205, %205 : vector<16x128xf32>
    %209 = arith.mulf %207, %207 : vector<16x128xf32>
    %cst_14 = arith.constant 5.000000e-01 : f32
    %210 = vector.broadcast %cst_14 : f32 to vector<16x128xf32>
    %211 = arith.mulf %210, %208 : vector<16x128xf32>
    %212 = arith.subf %201, %211 : vector<16x128xf32>
    %cst_15 = arith.constant 5.000000e-01 : f32
    %213 = vector.broadcast %cst_15 : f32 to vector<16x128xf32>
    %214 = arith.mulf %213, %209 : vector<16x128xf32>
    %215 = arith.subf %203, %214 : vector<16x128xf32>
    %cst_16 = arith.constant 5.000000e-01 : f32
    %216 = vector.broadcast %cst_16 : f32 to vector<16x128xf32>
    %217 = arith.mulf %216, %208 : vector<16x128xf32>
    %218 = arith.addf %201, %217 : vector<16x128xf32>
    %cst_17 = arith.constant 5.000000e-01 : f32
    %219 = vector.broadcast %cst_17 : f32 to vector<16x128xf32>
    %220 = arith.mulf %219, %209 : vector<16x128xf32>
    %221 = arith.addf %203, %220 : vector<16x128xf32>
    %222 = arith.mulf %208, %209 : vector<16x128xf32>
    %223 = vector.extract_strided_slice %3 {offsets = [25, 0, 0], sizes = [1, 16, 128], strides = [1, 1, 1]} : vector<30x16x128xf32> to vector<1x16x128xf32>
    %224 = vector.shape_cast %223 : vector<1x16x128xf32> to vector<16x128xf32>
    %225 = vector.extract_strided_slice %3 {offsets = [26, 0, 0], sizes = [1, 16, 128], strides = [1, 1, 1]} : vector<30x16x128xf32> to vector<1x16x128xf32>
    %226 = vector.shape_cast %225 : vector<1x16x128xf32> to vector<16x128xf32>
    %227 = vector.extract_strided_slice %3 {offsets = [27, 0, 0], sizes = [1, 16, 128], strides = [1, 1, 1]} : vector<30x16x128xf32> to vector<1x16x128xf32>
    %228 = vector.shape_cast %227 : vector<1x16x128xf32> to vector<16x128xf32>
    %229 = vector.extract_strided_slice %3 {offsets = [28, 0, 0], sizes = [1, 16, 128], strides = [1, 1, 1]} : vector<30x16x128xf32> to vector<1x16x128xf32>
    %230 = vector.shape_cast %229 : vector<1x16x128xf32> to vector<16x128xf32>
    %231 = arith.mulf %228, %228 : vector<16x128xf32>
    %232 = arith.mulf %230, %230 : vector<16x128xf32>
    %cst_18 = arith.constant 5.000000e-01 : f32
    %233 = vector.broadcast %cst_18 : f32 to vector<16x128xf32>
    %234 = arith.mulf %233, %231 : vector<16x128xf32>
    %235 = arith.subf %224, %234 : vector<16x128xf32>
    %cst_19 = arith.constant 5.000000e-01 : f32
    %236 = vector.broadcast %cst_19 : f32 to vector<16x128xf32>
    %237 = arith.mulf %236, %232 : vector<16x128xf32>
    %238 = arith.subf %226, %237 : vector<16x128xf32>
    %cst_20 = arith.constant 5.000000e-01 : f32
    %239 = vector.broadcast %cst_20 : f32 to vector<16x128xf32>
    %240 = arith.mulf %239, %231 : vector<16x128xf32>
    %241 = arith.addf %224, %240 : vector<16x128xf32>
    %cst_21 = arith.constant 5.000000e-01 : f32
    %242 = vector.broadcast %cst_21 : f32 to vector<16x128xf32>
    %243 = arith.mulf %242, %232 : vector<16x128xf32>
    %244 = arith.addf %226, %243 : vector<16x128xf32>
    %245 = arith.mulf %231, %232 : vector<16x128xf32>
    %246 = arith.minimumf %172, %218 : vector<16x128xf32>
    %247 = arith.maximumf %166, %212 : vector<16x128xf32>
    %248 = arith.subf %246, %247 : vector<16x128xf32>
    %cst_22 = arith.constant 0.000000e+00 : f32
    %249 = vector.broadcast %cst_22 : f32 to vector<16x128xf32>
    %250 = arith.maximumf %248, %249 : vector<16x128xf32>
    %251 = arith.minimumf %175, %221 : vector<16x128xf32>
    %252 = arith.maximumf %169, %215 : vector<16x128xf32>
    %253 = arith.subf %251, %252 : vector<16x128xf32>
    %cst_23 = arith.constant 0.000000e+00 : f32
    %254 = vector.broadcast %cst_23 : f32 to vector<16x128xf32>
    %255 = arith.maximumf %253, %254 : vector<16x128xf32>
    %256 = arith.mulf %250, %255 : vector<16x128xf32>
    %257 = arith.addf %176, %222 : vector<16x128xf32>
    %258 = arith.subf %257, %256 : vector<16x128xf32>
    %259 = arith.minimumf %195, %218 : vector<16x128xf32>
    %260 = arith.maximumf %189, %212 : vector<16x128xf32>
    %261 = arith.subf %259, %260 : vector<16x128xf32>
    %cst_24 = arith.constant 0.000000e+00 : f32
    %262 = vector.broadcast %cst_24 : f32 to vector<16x128xf32>
    %263 = arith.maximumf %261, %262 : vector<16x128xf32>
    %264 = arith.minimumf %198, %221 : vector<16x128xf32>
    %265 = arith.maximumf %192, %215 : vector<16x128xf32>
    %266 = arith.subf %264, %265 : vector<16x128xf32>
    %cst_25 = arith.constant 0.000000e+00 : f32
    %267 = vector.broadcast %cst_25 : f32 to vector<16x128xf32>
    %268 = arith.maximumf %266, %267 : vector<16x128xf32>
    %269 = arith.mulf %263, %268 : vector<16x128xf32>
    %270 = arith.addf %199, %222 : vector<16x128xf32>
    %271 = arith.subf %270, %269 : vector<16x128xf32>
    %272 = arith.minimumf %172, %241 : vector<16x128xf32>
    %273 = arith.maximumf %166, %235 : vector<16x128xf32>
    %274 = arith.subf %272, %273 : vector<16x128xf32>
    %cst_26 = arith.constant 0.000000e+00 : f32
    %275 = vector.broadcast %cst_26 : f32 to vector<16x128xf32>
    %276 = arith.maximumf %274, %275 : vector<16x128xf32>
    %277 = arith.minimumf %175, %244 : vector<16x128xf32>
    %278 = arith.maximumf %169, %238 : vector<16x128xf32>
    %279 = arith.subf %277, %278 : vector<16x128xf32>
    %cst_27 = arith.constant 0.000000e+00 : f32
    %280 = vector.broadcast %cst_27 : f32 to vector<16x128xf32>
    %281 = arith.maximumf %279, %280 : vector<16x128xf32>
    %282 = arith.mulf %276, %281 : vector<16x128xf32>
    %283 = arith.addf %176, %245 : vector<16x128xf32>
    %284 = arith.subf %283, %282 : vector<16x128xf32>
    %285 = arith.minimumf %195, %241 : vector<16x128xf32>
    %286 = arith.maximumf %189, %235 : vector<16x128xf32>
    %287 = arith.subf %285, %286 : vector<16x128xf32>
    %cst_28 = arith.constant 0.000000e+00 : f32
    %288 = vector.broadcast %cst_28 : f32 to vector<16x128xf32>
    %289 = arith.maximumf %287, %288 : vector<16x128xf32>
    %290 = arith.minimumf %198, %244 : vector<16x128xf32>
    %291 = arith.maximumf %192, %238 : vector<16x128xf32>
    %292 = arith.subf %290, %291 : vector<16x128xf32>
    %cst_29 = arith.constant 0.000000e+00 : f32
    %293 = vector.broadcast %cst_29 : f32 to vector<16x128xf32>
    %294 = arith.maximumf %292, %293 : vector<16x128xf32>
    %295 = arith.mulf %289, %294 : vector<16x128xf32>
    %296 = arith.addf %199, %245 : vector<16x128xf32>
    %297 = arith.subf %296, %295 : vector<16x128xf32>
    %298 = arith.mulf %269, %258 : vector<16x128xf32>
    %299 = arith.mulf %256, %271 : vector<16x128xf32>
    %300 = arith.cmpf ogt, %298, %299 : vector<16x128xf32>
    %301 = arith.mulf %295, %284 : vector<16x128xf32>
    %302 = arith.mulf %282, %297 : vector<16x128xf32>
    %303 = arith.cmpf ogt, %301, %302 : vector<16x128xf32>
    %304 = arith.ori %300, %303 : vector<16x128xi1>
    %305 = arith.andi %300, %303 : vector<16x128xi1>
    %cst_30 = arith.constant dense<true> : vector<16x128xi1>
    %306 = arith.xori %305, %cst_30 : vector<16x128xi1>
    %307 = arith.extui %306 : vector<16x128xi1> to vector<16x128xi32>
    %308 = arith.sitofp %307 : vector<16x128xi32> to vector<16x128xf32>
    %309 = arith.extui %304 : vector<16x128xi1> to vector<16x128xi32>
    %310 = arith.sitofp %309 : vector<16x128xi32> to vector<16x128xf32>
    %311 = vector.extract_strided_slice %1 {offsets = [24, 0, 0], sizes = [1, 16, 128], strides = [1, 1, 1]} : vector<30x16x128xf32> to vector<1x16x128xf32>
    %312 = vector.shape_cast %311 : vector<1x16x128xf32> to vector<16x128xf32>
    %313 = vector.extract_strided_slice %3 {offsets = [24, 0, 0], sizes = [1, 16, 128], strides = [1, 1, 1]} : vector<30x16x128xf32> to vector<1x16x128xf32>
    %314 = vector.shape_cast %313 : vector<1x16x128xf32> to vector<16x128xf32>
    %315 = arith.subf %312, %314 : vector<16x128xf32>
    %316 = arith.mulf %315, %315 : vector<16x128xf32>
    %317 = arith.subf %166, %212 : vector<16x128xf32>
    %318 = arith.mulf %317, %317 : vector<16x128xf32>
    %319 = arith.subf %169, %215 : vector<16x128xf32>
    %320 = arith.mulf %319, %319 : vector<16x128xf32>
    %321 = arith.addf %318, %320 : vector<16x128xf32>
    %322 = arith.subf %172, %218 : vector<16x128xf32>
    %323 = arith.mulf %322, %322 : vector<16x128xf32>
    %324 = arith.addf %321, %323 : vector<16x128xf32>
    %325 = arith.subf %175, %221 : vector<16x128xf32>
    %326 = arith.mulf %325, %325 : vector<16x128xf32>
    %327 = arith.addf %324, %326 : vector<16x128xf32>
    %cst_31 = arith.constant 5.000000e+00 : f32
    %328 = vector.broadcast %cst_31 : f32 to vector<16x128xf32>
    %329 = arith.mulf %328, %327 : vector<16x128xf32>
    %330 = arith.addf %316, %329 : vector<16x128xf32>
    %331 = arith.mulf %308, %330 : vector<16x128xf32>
    %332 = vector.extract_strided_slice %1 {offsets = [29, 0, 0], sizes = [1, 16, 128], strides = [1, 1, 1]} : vector<30x16x128xf32> to vector<1x16x128xf32>
    %333 = vector.shape_cast %332 : vector<1x16x128xf32> to vector<16x128xf32>
    %334 = vector.extract_strided_slice %3 {offsets = [29, 0, 0], sizes = [1, 16, 128], strides = [1, 1, 1]} : vector<30x16x128xf32> to vector<1x16x128xf32>
    %335 = vector.shape_cast %334 : vector<1x16x128xf32> to vector<16x128xf32>
    %336 = arith.subf %333, %335 : vector<16x128xf32>
    %337 = arith.mulf %336, %336 : vector<16x128xf32>
    %338 = arith.subf %189, %235 : vector<16x128xf32>
    %339 = arith.mulf %338, %338 : vector<16x128xf32>
    %340 = arith.subf %192, %238 : vector<16x128xf32>
    %341 = arith.mulf %340, %340 : vector<16x128xf32>
    %342 = arith.addf %339, %341 : vector<16x128xf32>
    %343 = arith.subf %195, %241 : vector<16x128xf32>
    %344 = arith.mulf %343, %343 : vector<16x128xf32>
    %345 = arith.addf %342, %344 : vector<16x128xf32>
    %346 = arith.subf %198, %244 : vector<16x128xf32>
    %347 = arith.mulf %346, %346 : vector<16x128xf32>
    %348 = arith.addf %345, %347 : vector<16x128xf32>
    %cst_32 = arith.constant 5.000000e+00 : f32
    %349 = vector.broadcast %cst_32 : f32 to vector<16x128xf32>
    %350 = arith.mulf %349, %348 : vector<16x128xf32>
    %351 = arith.addf %337, %350 : vector<16x128xf32>
    %352 = arith.mulf %310, %351 : vector<16x128xf32>
    %353 = arith.addf %331, %352 : vector<16x128xf32>
    %354 = arith.addf %152, %353 : vector<16x128xf32>
    %355 = arith.mulf %9, %354 : vector<16x128xf32>
    %356 = arith.mulf %13, %153 : vector<16x128xf32>
    %cst_33 = arith.constant 5.000000e-01 : f32
    %357 = vector.broadcast %cst_33 : f32 to vector<16x128xf32>
    %358 = arith.mulf %357, %356 : vector<16x128xf32>
    %359 = arith.addf %355, %358 : vector<16x128xf32>
    %360 = vector.extract_strided_slice %359 {offsets = [0, 0], sizes = [8, 128], strides = [1, 1]} : vector<16x128xf32> to vector<8x128xf32>
    %361 = vector.extract_strided_slice %359 {offsets = [8, 0], sizes = [8, 128], strides = [1, 1]} : vector<16x128xf32> to vector<8x128xf32>
    %362 = arith.addf %360, %361 : vector<8x128xf32>
    %c0_34 = arith.constant 0 : index
    %c0_35 = arith.constant 0 : index
    %c0_36 = arith.constant 0 : index
    %363 = vector.load %arg3[%c0_34, %c0_35, %c0_36] : memref<1x8x128xf32, #tpu.memory_space<vmem>>, vector<1x8x128xf32>
    %364 = vector.shape_cast %363 : vector<1x8x128xf32> to vector<8x128xf32>
    %365 = vector.shape_cast %362 : vector<8x128xf32> to vector<1x8x128xf32>
    tpu.vector_store %arg3[%c0_34, %c0_35, %c0_36], %365 {strides = array<i32>} : memref<1x8x128xf32, #tpu.memory_space<vmem>>, vector<1x8x128xf32>,
    return
  }
  func.func @transform_0(%arg0: i32) -> (i32, i32, i32) {
    %c0_i32 = arith.constant 0 : i32
    %c0_i32_0 = arith.constant 0 : i32
    %c0_i32_1 = arith.constant 0 : i32
    return %c0_i32, %arg0, %c0_i32_0 : i32, i32, i32
  }
  func.func @transform_1(%arg0: i32) -> (i32, i32, i32) {
    %c0_i32 = arith.constant 0 : i32
    %c0_i32_0 = arith.constant 0 : i32
    %c0_i32_1 = arith.constant 0 : i32
    return %c0_i32, %arg0, %c0_i32_0 : i32, i32, i32
  }
  func.func @transform_2(%arg0: i32) -> (i32, i32, i32) {
    %c0_i32 = arith.constant 0 : i32
    %c0_i32_0 = arith.constant 0 : i32
    %c0_i32_1 = arith.constant 0 : i32
    return %arg0, %c0_i32, %c0_i32_0 : i32, i32, i32
  }
}

</mosaic_0001>

<bundles_post_ra>
// kernel: yolo_v2_loss.1
= control target key start
LH: loop header
LB: loop body
LE: loop exit
PB: predicated region body
PF: predicated region fallthrough
CT: control target
= control target key end

     0   :  { %vm959_vm7 = vmmov 1   ;;  %s2037_s0 = inlined_call_operand.vmem [shape: bf16[30,16,128], index: 0, kind: input, shape index: {}]   ;;  %s2038_s1 = inlined_call_operand.vmem [shape: bf16[30,16,128], index: 1, kind: input, shape index: {}]   ;;  %s2039_s2 = inlined_call_operand.vmem [shape: f32[1,8,128], index: 2, kind: output, shape index: {}]  }
   0x1   :  { %v979_v0 = vld [vmem:[%s2037_s0] sm:$0xff]   ;;  %v984_v1 = vld [vmem:[%s2037_s0 + $0x8] sm:$0xff]   ;;  %v989_v2 = vld [vmem:[%s2037_s0 + $0x10] sm:$0xff]  }
   0x2   :  { %v994_v3 = vld [vmem:[%s2037_s0 + $0x18] sm:$0xff]   ;;  %v999_v4 = vld [vmem:[%s2037_s0 + $0x20] sm:$0xff]   ;;  %v1004_v5 = vld [vmem:[%s2037_s0 + $0x28] sm:$0xff]   ;;  %v2091_v12 = vunpack.c.l.bf16 %v979_v0  ;;  %v2093_v6 = vunpack.c.h.bf16 %v979_v0 }
   0x3   :  { %v1012_v9 = vld [vmem:[%s2037_s0 + $0x30] sm:$0xff]   ;;  %v1017_v10 = vld [vmem:[%s2037_s0 + $0x38] sm:$0xff]   ;;  %v1026_v15 = vld [vmem:[%s2037_s0 + $0x40] sm:$0xff]  }
   0x4   :  { %v1031_v16 = vld [vmem:[%s2037_s0 + $0x48] sm:$0xff]   ;;  %v1040_v21 = vld [vmem:[%s2037_s0 + $0x50] sm:$0xff]   ;;  %v1045_v22 = vld [vmem:[%s2037_s0 + $0x58] sm:$0xff]  }
   0x5   :  { %v1054_v27 = vld [vmem:[%s2037_s0 + $0x60] sm:$0xff]   ;;  %v1059_v28 = vld [vmem:[%s2037_s0 + $0x68] sm:$0xff]   ;;  %v1068_v33 = vld [vmem:[%s2037_s0 + $0x70] sm:$0xff]  }
   0x6   :  { %v1073_v34 = vld [vmem:[%s2037_s0 + $0x78] sm:$0xff]   ;;  %v1082_v39 = vld [vmem:[%s2037_s0 + $0x80] sm:$0xff]   ;;  %v1087_v40 = vld [vmem:[%s2037_s0 + $0x88] sm:$0xff]  }
   0x7   :  { %v1096_v45 = vld [vmem:[%s2037_s0 + $0x90] sm:$0xff]   ;;  %v1101_v46 = vld [vmem:[%s2037_s0 + $0x98] sm:$0xff]   ;;  %v1110_v51 = vld [vmem:[%s2037_s0 + $0xa0] sm:$0xff]  }
   0x8   :  { %v1115_v52 = vld [vmem:[%s2037_s0 + $0xa8] sm:$0xff]   ;;  %v1124_v57 = vld [vmem:[%s2037_s0 + $0xb0] sm:$0xff]   ;;  %v1129_v58 = vld [vmem:[%s2037_s0 + $0xb8] sm:$0xff]  }
   0x9   :  { %v1138_v63 = vld [vmem:[%s2037_s0 + $0xc0] sm:$0xff]   ;;  %v1143_v56 = vld [vmem:[%s2037_s0 + $0xc8] sm:$0xff]   ;;  %v1152_v62 = vld [vmem:[%s2037_s0 + $0xd0] sm:$0xff]  }
   0xa   :  { %2078 = vst [vmem:[#allocation2_spill] sm:$0xff] %v1138_v63  ;;  %2079 = vst [vmem:[#allocation3_spill] sm:$0xff] %v1143_v56  ;;  %v1157_v54 = vld [vmem:[%s2037_s0 + $0xd8] sm:$0xff]   ;;  %v1166_v61 = vld [vmem:[%s2037_s0 + $0xe0] sm:$0xff]   ;;  %v2103_v56 = vunpack.c.l.bf16 %v994_v3 }
   0xb   :  { %2080 = vst [vmem:[#allocation4_spill] sm:$0xff] %v1152_v62  ;;  %v1171_v50 = vld [vmem:[%s2037_s0 + $0xe8] sm:$0xff]   ;;  %v1180_v60 = vld [vmem:[%s2038_s1] sm:$0xff]   ;;  %v1194_v59 = vld [vmem:[%s2038_s1 + $0x10] sm:$0xff]  }
   0xc   :  { %2081 = vst [vmem:[#allocation5_spill] sm:$0xff] %v1171_v50  ;;  %v1185_v48 = vld [vmem:[%s2038_s1 + $0x8] sm:$0xff]   ;;  %v1199_v44 = vld [vmem:[%s2038_s1 + $0x18] sm:$0xff]   ;;  %v1208_v55 = vld [vmem:[%s2038_s1 + $0x20] sm:$0xff]   ;;  %v2090_v63 = vunpack.c.l.bf16 %v1180_v60  ;;  %v2092_v11 = vunpack.c.h.bf16 %v1180_v60  ;;  %v2098_v0 = vunpack.c.l.bf16 %v1194_v59 }
   0xd   :  { %v1213_v42 = vld [vmem:[%s2038_s1 + $0x28] sm:$0xff]   ;;  %v1222_v53 = vld [vmem:[%s2038_s1 + $0x30] sm:$0xff]   ;;  %v1227_v38 = vld [vmem:[%s2038_s1 + $0x38] sm:$0xff]   ;;  %v2094_v43 = vunpack.c.l.bf16 %v1185_v48  ;;  %v2102_v62 = vunpack.c.l.bf16 %v1199_v44  ;;  %v2105_v60 = vunpack.c.h.bf16 %v1199_v44  ;;  %v2110_v44 = vunpack.c.h.bf16 %v1208_v55 }
   0xe   :  { %v1236_v32 = vld [vmem:[%s2038_s1 + $0x40] sm:$0xff]   ;;  %v1241_v31 = vld [vmem:[%s2038_s1 + $0x48] sm:$0xff]   ;;  %v1250_v24 = vld [vmem:[%s2038_s1 + $0x50] sm:$0xff]   ;;  %v263_v13 = vsub.f32 %v2091_v12, %v2090_v63  ;;  %v2097_v12 = vunpack.c.h.bf16 %v984_v1 }
   0xf   :  { %v1255_v23 = vld [vmem:[%s2038_s1 + $0x58] sm:$0xff]   ;;  %v1264_v25 = vld [vmem:[%s2038_s1 + $0x60] sm:$0xff]   ;;  %v1269_v29 = vld [vmem:[%s2038_s1 + $0x68] sm:$0xff]  }
  0x10   :  { %v1278_v26 = vld [vmem:[%s2038_s1 + $0x70] sm:$0xff]   ;;  %v1283_v30 = vld [vmem:[%s2038_s1 + $0x78] sm:$0xff]   ;;  %v1292_v18 = vld [vmem:[%s2038_s1 + $0x80] sm:$0xff]  }
  0x11   :  { %v1297_v35 = vld [vmem:[%s2038_s1 + $0x88] sm:$0xff]   ;;  %v1306_v19 = vld [vmem:[%s2038_s1 + $0x90] sm:$0xff]   ;;  %v1311_v36 = vld [vmem:[%s2038_s1 + $0x98] sm:$0xff]  }
  0x12   :  { %v1320_v20 = vld [vmem:[%s2038_s1 + $0xa0] sm:$0xff]   ;;  %v1325_v41 = vld [vmem:[%s2038_s1 + $0xa8] sm:$0xff]   ;;  %v1334_v17 = vld [vmem:[%s2038_s1 + $0xb0] sm:$0xff]  }
  0x13   :  { %2082 = vst [vmem:[#allocation6_spill] sm:$0xff] %v1320_v20  ;;  %2083 = vst [vmem:[#allocation7_spill] sm:$0xff] %v1325_v41  ;;  %v1339_v37 = vld [vmem:[%s2038_s1 + $0xb8] sm:$0xff]   ;;  %v1348_v14 = vld [vmem:[%s2038_s1 + $0xc0] sm:$0xff]  }
  0x14   :  { %2084 = vst [vmem:[#allocation8_spill] sm:$0xff] %v1339_v37  ;;  %2085 = vst [vmem:[#allocation9_spill] sm:$0xff] %v1348_v14  ;;  %v1353_v49 = vld [vmem:[%s2038_s1 + $0xc8] sm:$0xff]   ;;  %v1366_v50 = vld [vmem:[%s2038_s1 + $0xd0] sm:$0xff]   ;;  %v264_v14 = vsub.f32 %v2093_v6, %v2092_v11  ;;  %v2096_v37 = vunpack.c.h.bf16 %v1185_v48  ;;  %v2099_v6 = vunpack.c.l.bf16 %v989_v2  ;;  %v275_v48 = vsub.f32 %v2103_v56, %v2102_v62 }
  0x15   :  { %2086 = vst [vmem:[#allocation10_spill] sm:$0xff] %v1353_v49  ;;  %2087 = vst [vmem:[#allocation11_spill] sm:$0xff] %v1366_v50  ;;  %v1371_v8 = vld [vmem:[%s2038_s1 + $0xd8] sm:$0xff]   ;;  %v1381_v47 = vld [vmem:[%s2038_s1 + $0xe0] sm:$0xff]   ;;  %v2095_v49 = vunpack.c.l.bf16 %v984_v1  ;;  %v2108_v62 = vunpack.c.l.bf16 %v1208_v55  ;;  %v2117_v55 = vunpack.c.l.bf16 %v1012_v9 }
  0x16   :  { %2088 = vst [vmem:[#allocation12_spill] sm:$0xff] %v1371_v8  ;;  %2089 = vst [vmem:[#allocation13_spill] sm:$0xff] %v1381_v47  ;;  %v956_v7 = vld [vmem:[%s2038_s1 + $0xe8] sm:$0xff]   ;;  %v268_v63 = vsub.f32 %v2097_v12, %v2096_v37  ;;  %v271_v11 = vsub.f32 %v2099_v6, %v2098_v0  ;;  %v2106_v0 = vunpack.c.h.bf16 %v994_v3  ;;  %v2109_v37 = vunpack.c.l.bf16 %v999_v4 }
  0x17   :  { %v267_v41 = vsub.f32 %v2095_v49, %v2094_v43  ;;  %v2100_v43 = vunpack.c.h.bf16 %v1194_v59  ;;  %v2101_v49 = vunpack.c.h.bf16 %v989_v2  ;;  %v1420_v12 = vunpack.c.l.bf16 %v956_v7 }
  0x18   :  { %v276_v6 = vsub.f32 %v2106_v0, %v2105_v60  ;;  %v1426_v59 = vunpack.c.h.bf16 %v956_v7  ;;  %v1428_v2 = vmul.f32 %v263_v13, %v263_v13  ;;  %v1434_v56 = vmul.f32 %v268_v63, %v268_v63 }
  0x19   :  { %v272_v20 = vsub.f32 %v2101_v49, %v2100_v43  ;;  %2104 = vst [vmem:[#allocation14_spill] sm:$0xff] %v1420_v12  ;;  %v1430_v43 = vmul.f32 %v264_v14, %v264_v14  ;;  %v1432_v49 = vmul.f32 %v267_v41, %v267_v41  ;;  %v279_v1 = vsub.f32 %v2109_v37, %v2108_v62 }
  0x1a   :  { %2107 = vst [vmem:[#allocation15_spill] sm:$0xff] %v1426_v59  ;;  %v2111_v3 = vunpack.c.h.bf16 %v999_v4  ;;  %v2112_v7 = vunpack.c.l.bf16 %v1213_v42  ;;  %v2113_v13 = vunpack.c.l.bf16 %v1004_v5  ;;  %v1448_v0 = vmul.f32 %v271_v11, %v271_v11 }
  0x1b   :  { %v1450_v41 = vmul.f32 %v272_v20, %v272_v20  ;;  %v277_v63 = vmul.f32 %v275_v48, %v275_v48  ;;  %v2114_v59 = vunpack.c.h.bf16 %v1213_v42  ;;  %v2115_v12 = vunpack.c.h.bf16 %v1004_v5 }
  0x1c   :  { %v280_v60 = vsub.f32 %v2111_v3, %v2110_v44  ;;  %v283_v14 = vsub.f32 %v2113_v13, %v2112_v7  ;;  %v1456_v62 = vmul.f32 %v276_v6, %v276_v6  ;;  %v2116_v4 = vunpack.c.l.bf16 %v1222_v53 }
  0x1d   :  { %v284_v37 = vsub.f32 %v2115_v12, %v2114_v59  ;;  %v2118_v3 = vunpack.c.h.bf16 %v1222_v53  ;;  %v2119_v11 = vunpack.c.h.bf16 %v1012_v9  ;;  %v2120_v20 = vunpack.c.l.bf16 %v1227_v38 }
  0x1e   :  { %v287_v44 = vsub.f32 %v2117_v55, %v2116_v4  ;;  %v2121_v48 = vunpack.c.l.bf16 %v1017_v10  ;;  %v2122_v5 = vunpack.c.h.bf16 %v1227_v38  ;;  %v2123_v12 = vunpack.c.h.bf16 %v1017_v10 }
  0x1f   :  { %v288_v7 = vsub.f32 %v2119_v11, %v2118_v3  ;;  %v2124_v59 = vunpack.c.l.bf16 %v1236_v32  ;;  %v2125_v13 = vunpack.c.l.bf16 %v1026_v15  ;;  %v2126_v53 = vunpack.c.h.bf16 %v1236_v32 }
  0x20   :  { %v291_v42 = vsub.f32 %v2121_v48, %v2120_v20  ;;  %v292_v6 = vsub.f32 %v2123_v12, %v2122_v5  ;;  %v2127_v9 = vunpack.c.h.bf16 %v1026_v15  ;;  %v2128_v3 = vunpack.c.l.bf16 %v1241_v31 }
  0x21   :  { %v295_v4 = vsub.f32 %v2125_v13, %v2124_v59  ;;  %v2129_v11 = vunpack.c.l.bf16 %v1031_v16  ;;  %v1486_v48 = vmul.f32 %v279_v1, %v279_v1  ;;  %v1488_v38 = vmul.f32 %v280_v60, %v280_v60 }
  0x22   :  { %v296_v55 = vsub.f32 %v2127_v9, %v2126_v53  ;;  %v285_v10 = vmul.f32 %v283_v14, %v283_v14  ;;  %v2132_v5 = vunpack.c.h.bf16 %v1241_v31  ;;  %v2133_v12 = vunpack.c.h.bf16 %v1031_v16 }
  0x23   :  { %v299_v20 = vsub.f32 %v2129_v11, %v2128_v3  ;;  %2130 = vst [vmem:[#allocation16_spill] sm:$0xff] %v1486_v48  ;;  %2131 = vst [vmem:[#allocation17_spill] sm:$0xff] %v1488_v38  ;;  %v286_v13 = vmul.f32 %v284_v37, %v284_v37  ;;  %v2134_v32 = vunpack.c.l.bf16 %v1250_v24  ;;  %v2135_v15 = vunpack.c.l.bf16 %v1040_v21 }
  0x24   :  { %v300_v59 = vsub.f32 %v2133_v12, %v2132_v5  ;;  %v2136_v9 = vunpack.c.h.bf16 %v1250_v24  ;;  %v2137_v3 = vunpack.c.h.bf16 %v1040_v21  ;;  %v2138_v60 = vunpack.c.l.bf16 %v1255_v23 }
  0x25   :  { %v303_v53 = vsub.f32 %v2135_v15, %v2134_v32  ;;  %v2139_v14 = vunpack.c.l.bf16 %v1045_v22  ;;  %v289_v31 = vmul.f32 %v287_v44, %v287_v44  ;;  %v290_v50 = vmul.f32 %v288_v7, %v288_v7 }
  0x26   :  { %v304_v1 = vsub.f32 %v2137_v3, %v2136_v9  ;;  %v293_v16 = vmul.f32 %v291_v42, %v291_v42  ;;  %v2140_v37 = vunpack.c.h.bf16 %v1255_v23  ;;  %v2141_v5 = vunpack.c.h.bf16 %v1045_v22 }
  0x27   :  { %v307_v11 = vsub.f32 %v2139_v14, %v2138_v60  ;;  %v294_v47 = vmul.f32 %v292_v6, %v292_v6  ;;  %v297_v32 = vmul.f32 %v295_v4, %v295_v4  ;;  %v298_v15 = vmul.f32 %v296_v55, %v296_v55 }
  0x28   :  { %v308_v12 = vsub.f32 %v2141_v5, %v2140_v37  ;;  %v1510_v24 = vmul.f32 %v299_v20, %v299_v20  ;;  %v1512_v21 = vmul.f32 %v300_v59, %v300_v59  ;;  %v2144_v9 = vunpack.c.l.bf16 %v1264_v25 }
  0x29   :  { %v2145_v3 = vunpack.c.l.bf16 %v1054_v27  ;;  %v2146_v44 = vunpack.c.h.bf16 %v1264_v25  ;;  %v2147_v7 = vunpack.c.h.bf16 %v1054_v27  ;;  %v2148_v22 = vunpack.c.l.bf16 %v1269_v29 }
  0x2a   :  { %2142 = vst [vmem:[#allocation18_spill] sm:$0xff] %v1510_v24  ;;  %2143 = vst [vmem:[#allocation19_spill] sm:$0xff] %v1512_v21  ;;  %v2149_v42 = vunpack.c.l.bf16 %v1059_v28  ;;  %v305_v4 = vmul.f32 %v303_v53, %v303_v53  ;;  %v306_v55 = vmul.f32 %v304_v1, %v304_v1  ;;  %v309_v20 = vmul.f32 %v307_v11, %v307_v11 }
  0x2b   :  { %v311_v60 = vsub.f32 %v2145_v3, %v2144_v9  ;;  %v312_v23 = vsub.f32 %v2147_v7, %v2146_v44  ;;  %v2150_v59 = vunpack.c.h.bf16 %v1269_v29  ;;  %v2151_v14 = vunpack.c.h.bf16 %v1059_v28 }
  0x2c   :  { %v315_v6 = vsub.f32 %v2149_v42, %v2148_v22  ;;  %v310_v5 = vmul.f32 %v308_v12, %v308_v12  ;;  %v2152_v9 = vunpack.c.l.bf16 %v1278_v26  ;;  %v2153_v25 = vunpack.c.l.bf16 %v1068_v33 }
  0x2d   :  { %v316_v37 = vsub.f32 %v2151_v14, %v2150_v59  ;;  %v2154_v3 = vunpack.c.h.bf16 %v1278_v26  ;;  %v2155_v44 = vunpack.c.h.bf16 %v1068_v33  ;;  %v2156_v53 = vunpack.c.l.bf16 %v1283_v30 }
  0x2e   :  { %v319_v27 = vsub.f32 %v2153_v25, %v2152_v9  ;;  %v2157_v1 = vunpack.c.l.bf16 %v1073_v34  ;;  %v2158_v29 = vunpack.c.h.bf16 %v1283_v30  ;;  %v2159_v28 = vunpack.c.h.bf16 %v1073_v34 }
  0x2f   :  { %v320_v7 = vsub.f32 %v2155_v44, %v2154_v3  ;;  %v2160_v22 = vunpack.c.l.bf16 %v1292_v18  ;;  %v2161_v42 = vunpack.c.l.bf16 %v1082_v39  ;;  %v2162_v26 = vunpack.c.h.bf16 %v1292_v18 }
  0x30   :  { %v323_v11 = vsub.f32 %v2157_v1, %v2156_v53  ;;  %v324_v12 = vsub.f32 %v2159_v28, %v2158_v29  ;;  %v2163_v33 = vunpack.c.h.bf16 %v1082_v39  ;;  %v2164_v9 = vunpack.c.l.bf16 %v1297_v35 }
  0x31   :  { %v327_v59 = vsub.f32 %v2161_v42, %v2160_v22  ;;  %v2165_v25 = vunpack.c.l.bf16 %v1087_v40  ;;  %v313_v44 = vmul.f32 %v311_v60, %v311_v60  ;;  %v314_v30 = vmul.f32 %v312_v23, %v312_v23 }
  0x32   :  { %v328_v14 = vsub.f32 %v2163_v33, %v2162_v26  ;;  %v317_v53 = vmul.f32 %v315_v6, %v315_v6  ;;  %v2166_v34 = vunpack.c.h.bf16 %v1297_v35  ;;  %v2167_v1 = vunpack.c.h.bf16 %v1087_v40 }
  0x33   :  { %v331_v3 = vsub.f32 %v2165_v25, %v2164_v9  ;;  %v318_v28 = vmul.f32 %v316_v37, %v316_v37  ;;  %v2168_v22 = vunpack.c.l.bf16 %v1306_v19  ;;  %v2169_v18 = vunpack.c.l.bf16 %v1096_v45 }
  0x34   :  { %v332_v29 = vsub.f32 %v2167_v1, %v2166_v34  ;;  %v2170_v42 = vunpack.c.h.bf16 %v1306_v19  ;;  %v2171_v26 = vunpack.c.h.bf16 %v1096_v45  ;;  %v2172_v60 = vunpack.c.l.bf16 %v1311_v36 }
  0x35   :  { %v335_v39 = vsub.f32 %v2169_v18, %v2168_v22  ;;  %v2173_v23 = vunpack.c.l.bf16 %v1101_v46  ;;  %v321_v35 = vmul.f32 %v319_v27, %v319_v27  ;;  %v322_v9 = vmul.f32 %v320_v7, %v320_v7 }
  0x36   :  { %v336_v33 = vsub.f32 %v2171_v26, %v2170_v42  ;;  %v325_v40 = vmul.f32 %v323_v11, %v323_v11  ;;  %v2174_v37 = vunpack.c.h.bf16 %v1311_v36  ;;  %v2175_v25 = vunpack.c.h.bf16 %v1101_v46 }
  0x37   :  { %v339_v6 = vsub.f32 %v2173_v23, %v2172_v60  ;;  %v326_v1 = vmul.f32 %v324_v12, %v324_v12  ;;  %v329_v22 = vmul.f32 %v327_v59, %v327_v59  ;;  %v330_v18 = vmul.f32 %v328_v14, %v328_v14 }
  0x38   :  { %v340_v34 = vsub.f32 %v2175_v25, %v2174_v37  ;;  %v333_v19 = vmul.f32 %v331_v3, %v331_v3  ;;  %v334_v8 = vmul.f32 %v332_v29, %v332_v29  ;;  %v343_v45 = vadd.f32 %v1432_v49, %v1428_v2 }
  0x39   :  { %v344_v42 = vadd.f32 %v1434_v56, %v1430_v43  ;;  %v345_v27 = vadd.f32 %v277_v63, %v1448_v0  ;;  %v337_v7 = vmul.f32 %v335_v39, %v335_v39  ;;  %v338_v11 = vmul.f32 %v336_v33, %v336_v33 }
  0x3a   :  { %v341_v26 = vmul.f32 %v339_v6, %v339_v6  ;;  %v346_v36 = vadd.f32 %v1456_v62, %v1450_v41  ;;  %v342_v46 = vmul.f32 %v340_v34, %v340_v34  ;;  %v347_v12 = vadd.f32 %v285_v10, %v1486_v48 }
  0x3b   :  { %v348_v59 = vadd.f32 %v286_v13, %v1488_v38  ;;  %v349_v14 = vadd.f32 %v293_v16, %v289_v31  ;;  %v350_v3 = vadd.f32 %v294_v47, %v290_v50  ;;  %v351_v2 = vadd.f32 %v1510_v24, %v297_v32 }
  0x3c   :  { %v352_v49 = vadd.f32 %v1512_v21, %v298_v15  ;;  %v353_v43 = vadd.f32 %v309_v20, %v305_v4  ;;  %v354_v56 = vadd.f32 %v310_v5, %v306_v55  ;;  %v355_v0 = vadd.f32 %v317_v53, %v313_v44 }
  0x3d   :  { %v1589_v63 = vadd.f32 %v318_v28, %v314_v30  ;;  %v357_v29 = vadd.f32 %v325_v40, %v321_v35  ;;  %v1591_v39 = vadd.f32 %v326_v1, %v322_v9  ;;  %v1593_v41 = vadd.f32 %v333_v19, %v329_v22 }
  0x3e   :  { %v1595_v62 = vadd.f32 %v334_v8, %v330_v18  ;;  %v1597_v10 = vadd.f32 %v341_v26, %v337_v7  ;;  %v2179_v47 = vunpack.c.l.bf16 %v1124_v57  ;;  %v2180_v13 = vunpack.c.h.bf16 %v1124_v57 }
  0x3f   :  { %2176 = vst [vmem:[#allocation20_spill] sm:$0xff] %v1593_v41  ;;  %v2181_v16 = vunpack.c.l.bf16 %v1129_v58  ;;  %v2182_v15 = vunpack.c.h.bf16 %v1129_v58  ;;  %v1611_v8 = vadd.f32 %v342_v46, %v338_v11  ;;  %v1613_v55 = vadd.f32 %v345_v27, %v343_v45 }
  0x40   :  { %2177 = vst [vmem:[#allocation21_spill] sm:$0xff] %v1595_v62  ;;  %2178 = vst [vmem:[#allocation22_spill] sm:$0xff] %v1597_v10  ;;  %v383_v50 = vmul.f32 %v2179_v47, %v2179_v47  ;;  %v384_v31 = vmul.f32 %v2180_v13, %v2180_v13  ;;  %v2184_v20 = vunpack.c.l.bf16 %v1157_v54  ;;  %v2185_v57 = vunpack.c.h.bf16 %v1157_v54 }
  0x41   :  { %v385_v32 = vmul.f32 %v2181_v16, %v2181_v16  ;;  %v386_v4 = vmul.f32 %v2182_v15, %v2182_v15  ;;  %2183 = vst [vmem:[#allocation23_spill] sm:$0xff] %v1611_v8  ;;  %v1621_v60 = vadd.f32 %v346_v36, %v344_v42  ;;  %v1623_v58 = vadd.f32 %v349_v14, %v347_v12  ;;  %v2206_v15 = vld [vmem:[#allocation3_spill] sm:$0xff]  ;;  %v2240_v8 = vld [vmem:[#allocation10_spill] sm:$0xff] }
  0x42   :  { %v401_v5 = vmul.f32 %v2184_v20, %v2184_v20  ;;  %v402_v44 = vmul.f32 %v2185_v57, %v2185_v57  ;;  %v387_v30 = vmul.f32 0.5, %v383_v50  ;;  %v388_v53 = vmul.f32 0.5, %v384_v31 }
  0x43   :  { %v391_v28 = vmul.f32 0.5, %v385_v32  ;;  %v392_v33 = vmul.f32 0.5, %v386_v4  ;;  %2186 = vst [vmem:[#allocation24_spill] sm:$0xff] %v1621_v60  ;;  %v1625_v23 = vadd.f32 %v350_v3, %v348_v59  ;;  %v1627_v6 = vadd.f32 %v353_v43, %v351_v2  ;;  %v2199_v3 = vld [vmem:[#allocation8_spill] sm:$0xff] }
  0x44   :  { %v1629_v35 = vadd.f32 %v354_v56, %v352_v49  ;;  %v1631_v9 = vadd.f32 %v357_v29, %v355_v0  ;;  %v1633_v40 = vmul.f32 %v385_v32, %v383_v50  ;;  %v1635_v54 = vmul.f32 %v386_v4, %v384_v31 }
  0x45   :  { %2187 = vst [vmem:[#allocation25_spill] sm:$0xff] %v1625_v23  ;;  %2188 = vst [vmem:[#allocation26_spill] sm:$0xff] %v1627_v6  ;;  %v2191_v37 = vunpack.c.l.bf16 %v1110_v51  ;;  %v2192_v34 = vunpack.c.h.bf16 %v1110_v51  ;;  %v2193_v22 = vunpack.c.l.bf16 %v1115_v52  ;;  %v2194_v19 = vunpack.c.h.bf16 %v1115_v52 }
  0x46   :  { %2189 = vst [vmem:[#allocation27_spill] sm:$0xff] %v1629_v35  ;;  %2190 = vst [vmem:[#allocation28_spill] sm:$0xff] %v1631_v9  ;;  %v2195_v42 = vunpack.c.l.bf16 %v1166_v61  ;;  %v2196_v7 = vunpack.c.h.bf16 %v1166_v61  ;;  %v405_v26 = vmul.f32 0.5, %v401_v5  ;;  %v406_v36 = vmul.f32 0.5, %v402_v44  ;;  %v2243_v9 = vld [vmem:[#allocation11_spill] sm:$0xff] }
  0x47   :  { %v1639_v25 = vsub.f32 %v2191_v37, %v387_v30  ;;  %v1643_v1 = vsub.f32 %v2192_v34, %v388_v53  ;;  %v1647_v18 = vsub.f32 %v2193_v22, %v391_v28  ;;  %v1651_v45 = vsub.f32 %v2194_v19, %v392_v33 }
  0x48   :  { %v403_v27 = vmul.f32 %v2195_v42, %v2195_v42  ;;  %v404_v11 = vmul.f32 %v2196_v7, %v2196_v7  ;;  %v2197_v46 = vunpack.c.l.bf16 %v1334_v17  ;;  %v2198_v59 = vunpack.c.h.bf16 %v1334_v17  ;;  %v2211_v7 = vld [vmem:[#allocation4_spill] sm:$0xff] }
  0x49   :  { %v2200_v2 = vunpack.c.l.bf16 %v2199_v3  ;;  %v2201_v43 = vunpack.c.h.bf16 %v2199_v3  ;;  %v2202_v56 = vmov %v2191_v37  ;;  %v2203_v29 = vmov %v2192_v34 }
  0x4a   :  { %v419_v12 = vmul.f32 %v2197_v46, %v2197_v46  ;;  %v420_v14 = vmul.f32 %v2198_v59, %v2198_v59  ;;  %v1673_v0 = vadd.f32 %v2202_v56, %v387_v30  ;;  %v1677_v47 = vadd.f32 %v2203_v29, %v388_v53 }
  0x4b   :  { %v421_v49 = vmul.f32 %v2200_v2, %v2200_v2  ;;  %v422_v61 = vmul.f32 %v2201_v43, %v2201_v43  ;;  %v409_v50 = vmul.f32 0.5, %v403_v27  ;;  %v410_v17 = vmul.f32 0.5, %v404_v11  ;;  %v2214_v2 = vld [vmem:[#allocation12_spill] sm:$0xff] }
  0x4c   :  { %v2204_v13 = vmov %v2193_v22  ;;  %v2205_v16 = vmov %v2194_v19  ;;  %v2207_v4 = vunpack.c.l.bf16 %v2206_v15  ;;  %v2208_v57 = vunpack.c.h.bf16 %v2206_v15 }
  0x4d   :  { %v1681_v31 = vadd.f32 %v2204_v13, %v391_v28  ;;  %v1685_v32 = vadd.f32 %v2205_v16, %v392_v33  ;;  %v1703_v34 = vmul.f32 %v403_v27, %v401_v5  ;;  %v1705_v52 = vmul.f32 %v404_v11, %v402_v44  ;;  %v2219_v13 = vld [vmem:[#allocation6_spill] sm:$0xff] }
  0x4e   :  { %v1689_v20 = vsub.f32 %v2207_v4, %v405_v26  ;;  %v1693_v30 = vsub.f32 %v2208_v57, %v406_v36  ;;  %v2209_v51 = vmov %v2207_v4  ;;  %v2210_v37 = vmov %v2208_v57 }
  0x4f   :  { %v1697_v53 = vadd.f32 %v2209_v51, %v405_v26  ;;  %v1701_v28 = vadd.f32 %v2210_v37, %v406_v36  ;;  %v423_v33 = vmul.f32 0.5, %v419_v12  ;;  %v424_v22 = vmul.f32 0.5, %v420_v14 }
  0x50   :  { %v427_v19 = vmul.f32 0.5, %v421_v49  ;;  %v428_v42 = vmul.f32 0.5, %v422_v61  ;;  %v2212_v46 = vunpack.c.l.bf16 %v2211_v7  ;;  %v2213_v3 = vunpack.c.h.bf16 %v2211_v7 }
  0x51   :  { %v2215_v43 = vunpack.c.l.bf16 %v2214_v2  ;;  %v2216_v5 = vunpack.c.h.bf16 %v2214_v2  ;;  %v2220_v16 = vunpack.c.l.bf16 %v2219_v13  ;;  %v2222_v4 = vunpack.c.h.bf16 %v2219_v13 }
  0x52   :  { %v1709_v59 = vsub.f32 %v2212_v46, %v409_v50  ;;  %v1713_v26 = vsub.f32 %v2213_v3, %v410_v17  ;;  %v2217_v27 = vmov %v2212_v46  ;;  %v2218_v56 = vmov %v2213_v3  ;;  %v2228_v3 = vld [vmem:[#allocation7_spill] sm:$0xff] }
  0x53   :  { %v1718_v36 = vmul.f32 %v2215_v43, %v2215_v43  ;;  %v1723_v44 = vmul.f32 %v2216_v5, %v2216_v5  ;;  %v1727_v11 = vadd.f32 %v2217_v27, %v409_v50  ;;  %v1731_v29 = vadd.f32 %v2218_v56, %v410_v17  ;;  %v2233_v5 = vld [vmem:[#allocation13_spill] sm:$0xff] }
  0x54   :  { %v1735_v15 = vsub.f32 %v2220_v16, %v423_v33  ;;  %v1739_v57 = vsub.f32 %v2222_v4, %v424_v22  ;;  %v2224_v51 = vmov %v2220_v16  ;;  %v2226_v46 = vmov %v2222_v4 }
  0x55   :  { %v1743_v37 = vadd.f32 %v2224_v51, %v423_v33  ;;  %v1747_v50 = vadd.f32 %v2226_v46, %v424_v22  ;;  %v2229_v7 = vunpack.c.l.bf16 %v2228_v3  ;;  %v2231_v2 = vunpack.c.h.bf16 %v2228_v3 }
  0x56   :  { %2221 = vst [vmem:[#allocation8_spill] sm:$0xff] %v1735_v15  ;;  %2223 = vst [vmem:[#allocation3_spill] sm:$0xff] %v1739_v57  ;;  %v2234_v27 = vunpack.c.l.bf16 %v2233_v5  ;;  %v2235_v16 = vunpack.c.h.bf16 %v2233_v5  ;;  %v441_v13 = vmul.f32 0.5, %v1718_v36  ;;  %v442_v22 = vmul.f32 0.5, %v1723_v44 }
  0x57   :  { %2225 = vst [vmem:[#allocation4_spill] sm:$0xff] %v1743_v37  ;;  %2227 = vst [vmem:[#allocation12_spill] sm:$0xff] %v1747_v50  ;;  %v1751_v17 = vadd.f32 %v2229_v7, %v427_v19  ;;  %v1755_v43 = vadd.f32 %v2231_v2, %v428_v42  ;;  %v455_v4 = vmin.f32 %v1673_v0, %v1743_v37  ;;  %v2236_v2 = vunpack.c.l.bf16 %v2228_v3 }
  0x58   :  { %v439_v56 = vmul.f32 %v2234_v27, %v2234_v27  ;;  %v440_v33 = vmul.f32 %v2235_v16, %v2235_v16  ;;  %v456_v51 = vmin.f32 %v1677_v47, %v1747_v50  ;;  %v457_v46 = vmax.f32 %v1639_v25, %v1735_v15 }
  0x59   :  { %2230 = vst [vmem:[#allocation6_spill] sm:$0xff] %v1751_v17  ;;  %2232 = vst [vmem:[#allocation7_spill] sm:$0xff] %v1755_v43  ;;  %v458_v7 = vmax.f32 %v1643_v1, %v1739_v57  ;;  %v1775_v5 = vsub.f32 %v2236_v2, %v427_v19  ;;  %v2238_v27 = vunpack.c.h.bf16 %v2228_v3  ;;  %v435_v24 = vmul.f32 %v421_v49, %v419_v12 }
  0x5a   :  { %v445_v21 = vmul.f32 0.5, %v439_v56  ;;  %v446_v38 = vmul.f32 0.5, %v440_v33  ;;  %v436_v48 = vmul.f32 %v422_v61, %v420_v14  ;;  %v2241_v62 = vunpack.c.l.bf16 %v2240_v8 }
  0x5b   :  { %2237 = vst [vmem:[#allocation13_spill] sm:$0xff] %v1775_v5  ;;  %v1779_v16 = vsub.f32 %v2238_v27, %v428_v42  ;;  %v2242_v41 = vunpack.c.h.bf16 %v2240_v8  ;;  %v2244_v6 = vunpack.c.l.bf16 %v2243_v9  ;;  %v2245_v3 = vunpack.c.h.bf16 %v2243_v9 }
  0x5c   :  { %v1783_v10 = vsub.f32 %v2241_v62, %v441_v13  ;;  %v2246_v2 = vmov %v2241_v62  ;;  %v459_v49 = vsub.f32 %v455_v4, %v457_v46  ;;  %v460_v61 = vsub.f32 %v456_v51, %v458_v7 }
  0x5d   :  { %2239 = vst [vmem:[#allocation29_spill] sm:$0xff] %v1779_v16  ;;  %v1787_v35 = vsub.f32 %v2242_v41, %v442_v22  ;;  %v1791_v19 = vsub.f32 %v2244_v6, %v445_v21  ;;  %v1795_v42 = vsub.f32 %v2245_v3, %v446_v38  ;;  %v1799_v12 = vadd.f32 %v2246_v2, %v441_v13 }
  0x5e   :  { %v2247_v14 = vmov %v2242_v41  ;;  %v463_v41 = vmin.f32 %v1681_v31, %v1751_v17  ;;  %v464_v6 = vmin.f32 %v1685_v32, %v1755_v43  ;;  %v2248_v27 = vunpack.c.l.bf16 %v2243_v9 }
  0x5f   :  { %v1803_v62 = vadd.f32 %v2247_v14, %v442_v22  ;;  %v2249_v23 = vunpack.c.h.bf16 %v2243_v9  ;;  %v465_v8 = vmax.f32 %v1647_v18, %v1775_v5  ;;  %v466_v22 = vmax.f32 %v1651_v45, %v1779_v16 }
  0x60   :  { %v1811_v3 = vadd.f32 %v2248_v27, %v445_v21  ;;  %v461_v4 = vmax.f32 %v459_v49, 0.0  ;;  %v462_v51 = vmax.f32 %v460_v61, 0.0  ;;  %v477_v46 = vmin.f32 %v1697_v53, %v1743_v37 }
  0x61   :  { %v1815_v13 = vadd.f32 %v2249_v23, %v446_v38  ;;  %v478_v7 = vmin.f32 %v1701_v28, %v1747_v50  ;;  %v467_v21 = vsub.f32 %v463_v41, %v465_v8  ;;  %v468_v2 = vsub.f32 %v464_v6, %v466_v22 }
  0x62   :  { %v479_v38 = vmax.f32 %v1689_v20, %v1735_v15  ;;  %v480_v23 = vmax.f32 %v1693_v30, %v1739_v57  ;;  %v485_v9 = vmin.f32 %v1727_v11, %v1751_v17  ;;  %v486_v14 = vmin.f32 %v1731_v29, %v1755_v43 }
  0x63   :  { %v487_v49 = vmax.f32 %v1709_v59, %v1775_v5  ;;  %v488_v61 = vmax.f32 %v1713_v26, %v1779_v16  ;;  %v469_v41 = vmax.f32 %v467_v21, 0.0  ;;  %v470_v6 = vmax.f32 %v468_v2, 0.0 }
  0x64   :  { %v481_v27 = vsub.f32 %v477_v46, %v479_v38  ;;  %v482_v8 = vsub.f32 %v478_v7, %v480_v23  ;;  %v1838_v22 = vadd.f32 %v435_v24, %v1633_v40  ;;  %v1841_v60 = vadd.f32 %v436_v48, %v1635_v54 }
  0x65   :  { %v489_v17 = vsub.f32 %v485_v9, %v487_v49  ;;  %v490_v50 = vsub.f32 %v486_v14, %v488_v61  ;;  %v1843_v37 = vmul.f32 %v469_v41, %v461_v4  ;;  %v1845_v43 = vmul.f32 %v470_v6, %v462_v51 }
  0x66   :  { %v483_v5 = vmax.f32 %v481_v27, 0.0  ;;  %v484_v57 = vmax.f32 %v482_v8, 0.0  ;;  %v499_v46 = vmin.f32 %v1673_v0, %v1799_v12  ;;  %v500_v7 = vmin.f32 %v1677_v47, %v1803_v62 }
  0x67   :  { %v491_v15 = vmax.f32 %v489_v17, 0.0  ;;  %v492_v16 = vmax.f32 %v490_v50, 0.0  ;;  %v453_v21 = vmul.f32 %v439_v56, %v1718_v36  ;;  %v454_v2 = vmul.f32 %v440_v33, %v1723_v44 }
  0x68   :  { %v501_v4 = vmax.f32 %v1639_v25, %v1783_v10  ;;  %v502_v51 = vmax.f32 %v1643_v1, %v1787_v35  ;;  %v495_v38 = vadd.f32 %v435_v24, %v1703_v34  ;;  %v496_v50 = vadd.f32 %v436_v48, %v1705_v52 }
  0x69   :  { %v507_v17 = vmin.f32 %v1681_v31, %v1811_v3  ;;  %v508_v23 = vmin.f32 %v1685_v32, %v1815_v13  ;;  %v509_v44 = vmax.f32 %v1647_v18, %v1791_v19  ;;  %v510_v56 = vmax.f32 %v1651_v45, %v1795_v42 }
  0x6a   :  { %v503_v9 = vsub.f32 %v499_v46, %v501_v4  ;;  %v504_v36 = vsub.f32 %v500_v7, %v502_v51  ;;  %v475_v33 = vsub.f32 %v1838_v22, %v1843_v37  ;;  %v476_v48 = vsub.f32 %v1841_v60, %v1845_v43 }
  0x6b   :  { %v493_v24 = vmul.f32 %v491_v15, %v483_v5  ;;  %v494_v14 = vmul.f32 %v492_v16, %v484_v57  ;;  %v511_v41 = vsub.f32 %v507_v17, %v509_v44  ;;  %v512_v6 = vsub.f32 %v508_v23, %v510_v56 }
  0x6c   :  { %v505_v49 = vmax.f32 %v503_v9, 0.0  ;;  %v506_v61 = vmax.f32 %v504_v36, 0.0  ;;  %v521_v27 = vmin.f32 %v1697_v53, %v1799_v12  ;;  %v522_v8 = vmin.f32 %v1701_v28, %v1803_v62 }
  0x6d   :  { %v523_v46 = vmax.f32 %v1689_v20, %v1783_v10  ;;  %v524_v22 = vmax.f32 %v1693_v30, %v1787_v35  ;;  %v513_v7 = vmax.f32 %v511_v41, 0.0  ;;  %v514_v60 = vmax.f32 %v512_v6, 0.0 }
  0x6e   :  { %v529_v15 = vmin.f32 %v1727_v11, %v1811_v3  ;;  %v530_v57 = vmin.f32 %v1731_v29, %v1815_v13  ;;  %v531_v4 = vmax.f32 %v1709_v59, %v1791_v19  ;;  %v532_v51 = vmax.f32 %v1713_v26, %v1795_v42 }
  0x6f   :  { %v525_v5 = vsub.f32 %v521_v27, %v523_v46  ;;  %v526_v16 = vsub.f32 %v522_v8, %v524_v22  ;;  %v515_v17 = vmul.f32 %v513_v7, %v505_v49  ;;  %v516_v23 = vmul.f32 %v514_v60, %v506_v61 }
  0x70   :  { %v517_v9 = vadd.f32 %v453_v21, %v1633_v40  ;;  %v518_v36 = vadd.f32 %v454_v2, %v1635_v54  ;;  %v533_v41 = vsub.f32 %v529_v15, %v531_v4  ;;  %v534_v6 = vsub.f32 %v530_v57, %v532_v51  ;;  %v2250_v15 = vld [vmem:[#allocation8_spill] sm:$0xff] }
  0x71   :  { %v527_v44 = vmax.f32 %v525_v5, 0.0  ;;  %v528_v56 = vmax.f32 %v526_v16, 0.0  ;;  %v1891_v27 = vadd.f32 %v1591_v39, %v1589_v63  ;;  %v1895_v8 = vadd.f32 %v1623_v58, %v1613_v55  ;;  %v2251_v5 = vld [vmem:[#allocation3_spill] sm:$0xff] }
  0x72   :  { %v497_v46 = vsub.f32 %v495_v38, %v493_v24  ;;  %v498_v22 = vsub.f32 %v496_v50, %v494_v14  ;;  %v535_v49 = vmax.f32 %v533_v41, 0.0  ;;  %v536_v61 = vmax.f32 %v534_v6, 0.0  ;;  %v2261_v41 = vld [vmem:[#allocation12_spill] sm:$0xff] }
  0x73   :  { %v539_v40 = vadd.f32 %v453_v21, %v1703_v34  ;;  %v540_v54 = vadd.f32 %v454_v2, %v1705_v52  ;;  %v519_v7 = vsub.f32 %v517_v9, %v515_v17  ;;  %v520_v60 = vsub.f32 %v518_v36, %v516_v23  ;;  %v2252_v52 = vld [vmem:[#allocation9_spill] sm:$0xff]  ;;  %v2254_v2 = vld [vmem:[#allocation2_spill] sm:$0xff] }
  0x74   :  { %v573_v57 = vsub.f32 %v1639_v25, %v2250_v15  ;;  %v574_v63 = vsub.f32 %v1643_v1, %v2251_v5  ;;  %v537_v39 = vmul.f32 %v535_v49, %v527_v44  ;;  %v538_v16 = vmul.f32 %v536_v61, %v528_v56  ;;  %v2258_v9 = vld [vmem:[#allocation13_spill] sm:$0xff]  ;;  %v2260_v44 = vld [vmem:[#allocation4_spill] sm:$0xff]  ;;  %v2262_v49 = vld [vmem:[#allocation6_spill] sm:$0xff] }
  0x75   :  { %v1903_v55 = vmul.f32 %v493_v24, %v475_v33  ;;  %v1905_v58 = vmul.f32 %v494_v14, %v476_v48  ;;  %v1908_v38 = vmul.f32 %v497_v46, %v1843_v37  ;;  %v1911_v34 = vmul.f32 %v498_v22, %v1845_v43  ;;  %v2259_v36 = vld [vmem:[#allocation29_spill] sm:$0xff] }
  0x76   :  { %v2253_v21 = vunpack.c.l.bf16 %v2252_v52  ;;  %v2255_v50 = vunpack.c.l.bf16 %v2254_v2  ;;  %v2256_v4 = vunpack.c.h.bf16 %v2252_v52  ;;  %v2257_v1 = vunpack.c.h.bf16 %v2254_v2 }
  0x77   :  { %v541_v33 = vsub.f32 %v539_v40, %v537_v39  ;;  %v542_v24 = vsub.f32 %v540_v54, %v538_v16  ;;  %v575_v48 = vmul.f32 %v573_v57, %v573_v57  ;;  %v576_v14 = vmul.f32 %v574_v63, %v574_v63  ;;  %v2263_v40 = vld [vmem:[#allocation7_spill] sm:$0xff] }
  0x78   :  { %v569_v25 = vsub.f32 %v2255_v50, %v2253_v21  ;;  %v570_v51 = vsub.f32 %v2257_v1, %v2256_v4  ;;  %v577_v37 = vsub.f32 %v1647_v18, %v2258_v9  ;;  %v578_v43 = vsub.f32 %v1651_v45, %v2259_v36  ;;  %v2274_v36 = vld [vmem:[#allocation25_spill] sm:$0xff] }
  0x79   :  { %v583_v56 = vsub.f32 %v1673_v0, %v2260_v44  ;;  %v584_v6 = vsub.f32 %v1677_v47, %v2261_v41  ;;  %v549_v46 = vmul.f32 %v537_v39, %v519_v7  ;;  %v551_v22 = vmul.f32 %v541_v33, %v515_v17  ;;  %v2275_v44 = vld [vmem:[#allocation26_spill] sm:$0xff] }
  0x7a   :  { %v589_v61 = vsub.f32 %v1681_v31, %v2262_v49  ;;  %v590_v54 = vsub.f32 %v1685_v32, %v2263_v40  ;;  %v579_v15 = vmul.f32 %v577_v37, %v577_v37  ;;  %v580_v57 = vmul.f32 %v578_v43, %v578_v43 }
  0x7b   :  { %v585_v18 = vmul.f32 %v583_v56, %v583_v56  ;;  %v586_v5 = vmul.f32 %v584_v6, %v584_v6  ;;  %vm547_vm0 = vcmp.gt.f32.partialorder %v1903_v55, %v1908_v38  ;;  %vm548_vm1 = vcmp.gt.f32.partialorder %v1905_v58, %v1911_v34  ;;  %v2276_v56 = vld [vmem:[#allocation28_spill] sm:$0xff]  ;;  %v2277_v6 = vld [vmem:[#allocation27_spill] sm:$0xff]  ;;  %v2291_v58 = vld [vmem:[#allocation18_spill] sm:$0xff] }
  0x7c   :  { %v550_v45 = vmul.f32 %v538_v16, %v520_v60  ;;  %v552_v0 = vmul.f32 %v542_v24, %v516_v23  ;;  %v581_v47 = vadd.f32 %v579_v15, %v575_v48  ;;  %v582_v17 = vadd.f32 %v580_v57, %v576_v14  ;;  %v2264_v60 = vld [vmem:[#allocation14_spill] sm:$0xff]  ;;  %v2271_v24 = vld [vmem:[#allocation15_spill] sm:$0xff] }
  0x7d   :  { %v591_v7 = vmul.f32 %v589_v61, %v589_v61  ;;  %v592_v63 = vmul.f32 %v590_v54, %v590_v54  ;;  %v571_v31 = vmul.f32 %v569_v25, %v569_v25  ;;  %v605_v32 = vsub.f32 %v1689_v20, %v1783_v10  ;;  %v2283_v57 = vld [vmem:[#allocation22_spill] sm:$0xff] }
  0x7e   :  { %v606_v39 = vsub.f32 %v1693_v30, %v1787_v35  ;;  %v609_v52 = vsub.f32 %v1709_v59, %v1791_v19  ;;  %vm553_vm2 = vcmp.gt.f32.partialorder %v549_v46, %v551_v22  ;;  %v572_v21 = vmul.f32 %v570_v51, %v570_v51  ;;  %v2267_v59 = vld [vmem:[#allocation5_spill] sm:$0xff] }
  0x7f   :  { %v587_v2 = vadd.f32 %v585_v18, %v581_v47  ;;  %v588_v50 = vadd.f32 %v586_v5, %v582_v17  ;;  %vm257_vm3 = vcmp.eq.f32.partialorder %v2264_v60, 0.0  ;;  %vm554_vm4 = vcmp.gt.f32.partialorder %v550_v45, %v552_v0  ;;  %vm1952_vm5 = vmand %vm547_vm0, %vm553_vm2  ;;  %v2284_v5 = vld [vmem:[#allocation21_spill] sm:$0xff]  ;;  %v2285_v47 = vld [vmem:[#allocation23_spill] sm:$0xff] }
  0x80   :  { %v607_v23 = vmul.f32 %v605_v32, %v605_v32  ;;  %v608_v16 = vmul.f32 %v606_v39, %v606_v39  ;;  %v610_v25 = vsub.f32 %v1713_v26, %v1795_v42  ;;  %v611_v20 = vmul.f32 %v609_v52, %v609_v52  ;;  %vm1967_vm6 = vmand %vm548_vm1, %vm554_vm4  ;;  %v2290_v0 = vld [vmem:[#allocation16_spill] sm:$0xff] }
  0x81   :  { %v593_v4 = vadd.f32 %v591_v7, %v587_v2  ;;  %v594_v10 = vadd.f32 %v592_v63, %v588_v50  ;;  %v615_v35 = vsub.f32 %v1697_v53, %v1799_v12  ;;  %v2268_v19 = vunpack.c.l.bf16 %v2267_v59  ;;  %vm1984_vm8 = vmxor %vm1952_vm5, %vm959_vm7 }
  0x82   :  { %v612_v51 = vmul.f32 %v610_v25, %v610_v25  ;;  %v616_v26 = vsub.f32 %v1701_v28, %v1803_v62  ;;  %v621_v42 = vsub.f32 %v1727_v11, %v1811_v3  ;;  %v2272_v48 = vunpack.c.h.bf16 %v2267_v59  ;;  %v2273_v3 = vld [vmem:[#allocation24_spill] sm:$0xff]  ;;  %vm1991_vm10 = vmxor %vm1967_vm6, %vm959_vm7  ;;  %v2293_v25 = vld [vmem:[#allocation19_spill] sm:$0xff] }
  0x83   :  { %v601_v1 = vsub.f32 %v2268_v19, %v2264_v60  ;;  %v595_v12 = vmul.f32 5.0, %v593_v4  ;;  %v596_v33 = vmul.f32 5.0, %v594_v10  ;;  %v613_v9 = vadd.f32 %v611_v20, %v607_v23  ;;  %vm2003_vm11 = vmor %vm547_vm0, %vm553_vm2 }
  0x84   :  { %v602_v14 = vsub.f32 %v2272_v48, %v2271_v24  ;;  %v614_v37 = vadd.f32 %v612_v51, %v608_v16  ;;  %v617_v28 = vmul.f32 %v615_v35, %v615_v35  ;;  %v618_v62 = vmul.f32 %v616_v26, %v616_v26  ;;  %vm2011_vm12 = vmor %vm548_vm1, %vm554_vm4  ;;  %v2292_v16 = vld [vmem:[#allocation17_spill] sm:$0xff] }
  0x85   :  { %v622_v11 = vsub.f32 %v1731_v29, %v1815_v13  ;;  %v374_v43 = vadd.f32 %v2274_v36, %v2273_v3  ;;  %v375_v41 = vadd.f32 %v2276_v56, %v2275_v44  ;;  %v376_v49 = vadd.f32 %v1891_v27, %v2277_v6  ;;  %v2282_v27 = vld [vmem:[#allocation20_spill] sm:$0xff] }
  0x86   :  { %v623_v40 = vmul.f32 %v621_v42, %v621_v42  ;;  %vm258_vm9 = vcmp.eq.f32.partialorder %v2271_v24, 0.0  ;;  %v619_v13 = vadd.f32 %v617_v28, %v613_v9  ;;  %v620_v54 = vadd.f32 %v618_v62, %v614_v37 }
  0x87   :  { %v624_v15 = vmul.f32 %v622_v11, %v622_v11  ;;  %v371_v18 = vadd.f32 %v2283_v57, %v2282_v27  ;;  %v372_v17 = vadd.f32 %v2285_v47, %v2284_v5  ;;  %v603_v63 = vmul.f32 %v601_v1, %v601_v1 }
  0x88   :  { %v604_v32 = vmul.f32 %v602_v14, %v602_v14  ;;  %v597_v52 = vadd.f32 %v595_v12, %v571_v31  ;;  %v598_v2 = vadd.f32 %v596_v33, %v572_v21  ;;  %v625_v46 = vadd.f32 %v623_v40, %v619_v13 }
  0x89   :  { %v626_v22 = vadd.f32 %v624_v15, %v620_v54  ;;  %v377_v55 = vadd.f32 %v375_v41, %v1895_v8  ;;  %v378_v38 = vadd.f32 %v376_v49, %v374_v43  ;;  %v960_v50 = vmov 0.0  }
  0x8a   :  { %v655_v23 = vsel %vm1984_vm8, 1.0, %v960_v50  ;;  %v656_v45 = vsel %vm1991_vm10, 1.0, %v960_v50  ;;  %v381_v34 = vadd.f32 %v2291_v58, %v2290_v0  ;;  %v382_v4 = vadd.f32 %v2293_v25, %v2292_v16 }
  0x8b   :  { %v627_v31 = vmul.f32 5.0, %v625_v46  ;;  %v628_v21 = vmul.f32 5.0, %v626_v22  ;;  %v653_v10 = vsel %vm257_vm3, 1.0, %v960_v50  ;;  %v654_v8 = vsel %vm258_vm9, 1.0, %v960_v50 }
  0x8c   :  { %v657_v20 = vsel %vm2003_vm11, 1.0, %v960_v50  ;;  %v658_v35 = vsel %vm2011_vm12, 1.0, %v960_v50  ;;  %v599_v30 = vmul.f32 %v655_v23, %v597_v52  ;;  %v600_v59 = vmul.f32 %v656_v45, %v598_v2 }
  0x8d   :  { %v629_v19 = vadd.f32 %v627_v31, %v603_v63  ;;  %v630_v1 = vadd.f32 %v628_v21, %v604_v32  ;;  %vm251_vm13 = vcmp.gt.f32.partialorder %v2264_v60, 0.0  ;;  %vm252_vm14 = vcmp.gt.f32.partialorder %v2271_v24, 0.0 }
  0x8e   :  { %v379_v51 = vadd.f32 %v377_v55, %v371_v18  ;;  %v380_v26 = vadd.f32 %v378_v38, %v372_v17  ;;  %v639_v12 = vmul.f32 %v653_v10, %v381_v34  ;;  %v640_v33 = vmul.f32 %v654_v8, %v382_v4 }
  0x8f   :  { %v631_v42 = vmul.f32 %v657_v20, %v629_v19  ;;  %v632_v53 = vmul.f32 %v658_v35, %v630_v1  ;;  %v651_v9 = vsel %vm251_vm13, 1.0, %v960_v50  ;;  %v652_v37 = vsel %vm252_vm14, 1.0, %v960_v50 }
  0x90   :  { %v641_v11 = vmul.f32 0.5, %v639_v12  ;;  %v642_v3 = vmul.f32 0.5, %v640_v33 }
  0x91   :  { %v633_v48 = vadd.f32 %v631_v42, %v599_v30  ;;  %v634_v14 = vadd.f32 %v632_v53, %v600_v59 }
  0x93   :  { %v635_v28 = vadd.f32 %v633_v48, %v379_v51  ;;  %v636_v62 = vadd.f32 %v634_v14, %v380_v26 }
  0x95   :  { %v637_v36 = vmul.f32 %v651_v9, %v635_v28  ;;  %v638_v43 = vmul.f32 %v652_v37, %v636_v62 }
  0x97   :  { %v643_v44 = vadd.f32 %v641_v11, %v637_v36  ;;  %v644_v60 = vadd.f32 %v642_v3, %v638_v43 }
  0x99   :  { %v645_v56 = vadd.f32 %v644_v60, %v643_v44 }
  0x9b   :  { %646 = vst [vmem:[%s2039_s2] sm:$0xff] %v645_v56 }

</bundles_post_ra>
